<compile_context>
chip_gen: v6e
topology: v6e:2x2x1
jax: 0.10.0
libtpu: 0.0.40
codegen_flags: <defaults>
</compile_context>

<pallas_src>
import functools

import jax
import jax.numpy as jnp
from jax.experimental import pallas as pl
from jax.experimental.pallas import tpu as pltpu


def _log_score(h, cls, axis):
    """Log-softmax score of class `cls` along `axis`, with a FIXED left-to-right
    reduction order so the row path (axis=1 over [T, C]) and the column path
    (axis=0 over [C, T]) produce bit-identical scores for the same sample
    (keeps the diagonal comparison s_i >= s_i exactly true).
    C is small and static, so the unrolled Python loop is cheap."""
    num_classes = h.shape[axis]
    sl = (lambda k: h[:, k:k + 1]) if axis == 1 else (lambda k: h[k:k + 1, :])
    m = sl(0)
    for k in range(1, num_classes):
        m = jnp.maximum(m, sl(k))
    s = jnp.exp(sl(0) - m)
    for k in range(1, num_classes):
        s = s + jnp.exp(sl(k) - m)
    return sl(cls) - m - jnp.log(s)


def _pr_auc_kernel(hh_row_ref, hht_col_ref, y_row_ref, y_col_ref, valid_col_ref,
                   out_ref, acc_ref, *, class_to_predict):
    # hh_row_ref:  [TM, C] f32 logits (row tile, "i" side)
    # hht_col_ref: [C, TK] f32 logits transposed (column tile, "j" side)
    # y_row_ref:   [TM, 1] i32 labels (row side)
    # y_col_ref:   [TK, 1] i32 labels (column side)
    # valid_col_ref: [TK, 1] f32 (1 for real samples, 0 for padding)
    # out_ref:     [8, 128] f32 per-row-tile partials (lane0=contrib_sum, lane1=n_pos)
    # acc_ref:     [TM, 128] f32 VMEM accumulator (lane0=rank, lane1=tp)
    j = pl.program_id(1)
    cls = class_to_predict
    tk = y_col_ref.shape[0]

    @pl.when(j == 0)
    def _():
        acc_ref[...] = jnp.zeros_like(acc_ref)

    # log-space scores (monotone-equivalent to softmax prob of `cls`)
    s_i = _log_score(hh_row_ref[...], cls, axis=1)        # [TM, 1]
    s_j = _log_score(hht_col_ref[...], cls, axis=0)       # [1, TK]

    # pairwise comparison in f32; the 0/1 result is carried in bf16 (exact)
    ge = (s_j >= s_i).astype(jnp.bfloat16)                # [TM, TK]

    # Fused rank/tp reduction on the MXU: rhs lane 0 = valid_j, lane 1 = pos_j.
    valid_j = valid_col_ref[...]                                          # [TK, 1]
    pos_j = (y_col_ref[...] == cls).astype(jnp.float32) * valid_j         # [TK, 1]
    lane = jax.lax.broadcasted_iota(jnp.int32, (tk, 128), 1)
    rhs = jnp.where(lane == 0, valid_j,
                    jnp.where(lane == 1, pos_j, 0.0)).astype(jnp.bfloat16)
    acc_ref[...] += jnp.dot(ge, rhs, preferred_element_type=jnp.float32)  # [TM, 128]

    @pl.when(j == pl.num_programs(1) - 1)
    def _():
        acc = acc_ref[...]
        rank = acc[:, 0:1]                                                # [TM, 1]
        tp = acc[:, 1:2]                                                  # [TM, 1]
        pos_i = (y_row_ref[...] == cls).astype(jnp.float32)               # [TM, 1]
        p_at = tp / jnp.maximum(rank, 1.0)
        p_prev = jnp.where(rank > 1.0,
                           (tp - 1.0) / jnp.maximum(rank - 1.0, 1.0), 1.0)
        contrib = pos_i * 0.5 * (p_at + p_prev)                           # [TM, 1]
        csum = jnp.sum(contrib, axis=(0, 1), keepdims=True)               # [1, 1]
        psum = jnp.sum(pos_i, axis=(0, 1), keepdims=True)                 # [1, 1]
        rows = jax.lax.broadcasted_iota(jnp.int32, (8, 128), 0)
        cols = jax.lax.broadcasted_iota(jnp.int32, (8, 128), 1)
        out_ref[...] = jnp.where((rows == 0) & (cols == 0), csum,
                                 jnp.where((rows == 0) & (cols == 1), psum, 0.0))


@functools.partial(jax.jit, static_argnames=("class_to_predict", "tile"))
def pr_auc(hh, yy, class_to_predict, tile=128):
    """hh: [N, C] logits, yy: [N] int labels -> scalar f32 PR-AUC.

    tile=128 is fine for small N; at scale raise to ~512 on v5e/v6e (re-derive
    a smaller budget for v7x's 64 MiB physical / 32 MiB scoped VMEM)."""
    n, c_dim = hh.shape
    n_pad = ((n + tile - 1) // tile) * tile
    pad = n_pad - n

    # Pad with invalid rows: label -1 never matches the class, and the valid
    # mask zeroes their contribution to rank, so the pad content is irrelevant.
    hh_p = jnp.pad(hh.astype(jnp.float32), ((0, pad), (0, 0)))
    yy_p = jnp.pad(yy.astype(jnp.int32), ((0, pad),), constant_values=-1)
    yy_col = yy_p.reshape(n_pad, 1)
    valid = (jnp.arange(n_pad) < n).astype(jnp.float32).reshape(n_pad, 1)
    hh_t = hh_p.T                       # [C, n_pad] — layout plumbing only

    num_i = n_pad // tile
    num_j = n_pad // tile

    kernel = functools.partial(_pr_auc_kernel, class_to_predict=class_to_predict)
    out = pl.pallas_call(
        kernel,
        out_shape=jax.ShapeDtypeStruct((8 * num_i, 128), jnp.float32),
        grid_spec=pltpu.PrefetchScalarGridSpec(
            num_scalar_prefetch=0,
            grid=(num_i, num_j),
            in_specs=[
                pl.BlockSpec((tile, c_dim), lambda i, j: (i, 0)),   # logits, row tile
                pl.BlockSpec((c_dim, tile), lambda i, j: (0, j)),   # logits^T, col tile
                pl.BlockSpec((tile, 1), lambda i, j: (i, 0)),       # labels, row side
                pl.BlockSpec((tile, 1), lambda i, j: (j, 0)),       # labels, col side
                pl.BlockSpec((tile, 1), lambda i, j: (j, 0)),       # valid mask, col side
            ],
            out_specs=pl.BlockSpec((8, 128), lambda i, j: (i, 0)),
            scratch_shapes=[pltpu.VMEM((tile, 128), jnp.float32)],
        ),
        compiler_params=pltpu.CompilerParams(
            dimension_semantics=("parallel", "arbitrary"),
            vmem_limit_bytes=32 * 1024 * 1024,
        ),
    )(hh_p, hh_t, yy_col, yy_col, valid)

    total = jnp.sum(out[:, 0])
    n_pos = jnp.sum(out[:, 1])
    # TODO(synk): sklearn emits NaN (with a warning) when there are no positive
    # samples; we return 0.0 instead of 0/0.
    return jnp.where(n_pos > 0, total / jnp.maximum(n_pos, 1.0), 0.0)


if __name__ == "__main__":
    key = jax.random.PRNGKey(0)
    k1, k2 = jax.random.split(key)

    N, C = 200, 4              # non-multiple of the 128 tile -> exercises padding & 2x2 grid
    class_to_predict = 1

    hh = jax.random.normal(k1, (N, C), dtype=jnp.float32)        # logits
    yy = jax.random.randint(k2, (N,), 0, C, dtype=jnp.int32)     # integer class labels

    auc_val = pr_auc(hh, yy, class_to_predict)
    jax.block_until_ready(auc_val)

    # Pure-JAX reference with the same pairwise formulation (sanity-checks the
    # tiling, padding and bf16-MXU accumulation paths).
    s = hh[:, class_to_predict] - jax.scipy.special.logsumexp(hh, axis=1)
    pos = (yy == class_to_predict).astype(jnp.float32)
    ge = (s[None, :] >= s[:, None]).astype(jnp.float32)
    rank = ge.sum(axis=1)
    tp = ge @ pos
    p_at = tp / rank
    p_prev = jnp.where(rank > 1, (tp - 1) / jnp.maximum(rank - 1, 1), 1.0)
    ref = jnp.sum(pos * 0.5 * (p_at + p_prev)) / jnp.sum(pos)

    assert abs(float(auc_val) - float(ref)) < 2e-5, (float(auc_val), float(ref))
    print("KERNEL_OK")
</pallas_src>

<mosaic_0001>
module attributes {stable_mosaic.version = 11 : i64} {
  func.func @_pr_auc_kernel(%arg0: i32, %arg1: i32, %arg2: memref<128x4xf32, #tpu.memory_space<vmem>>, %arg3: memref<4x128xf32, #tpu.memory_space<vmem>>, %arg4: memref<128x1xi32, #tpu.memory_space<vmem>>, %arg5: memref<128x1xi32, #tpu.memory_space<vmem>>, %arg6: memref<128x1xf32, #tpu.memory_space<vmem>>, %arg7: memref<8x128xf32, #tpu.memory_space<vmem>>, %arg8: memref<128x128xf32, #tpu.memory_space<vmem>>) attributes {dimension_semantics = [#tpu.dimension_semantics<parallel>, #tpu.dimension_semantics<arbitrary>], iteration_bounds = array<i64: 2, 2>, scalar_prefetch = 0 : i64, scratch_operands = 1 : i64, tpu.core_type = #tpu.core_type<tc>, window_params = [{transform_indices = @transform_0, window_bounds = array<i64: 128, 4>}, {transform_indices = @transform_1, window_bounds = array<i64: 4, 128>}, {transform_indices = @transform_2, window_bounds = array<i64: 128, 1>}, {transform_indices = @transform_3, window_bounds = array<i64: 128, 1>}, {transform_indices = @transform_4, window_bounds = array<i64: 128, 1>}, {transform_indices = @transform_5, window_bounds = array<i64: 8, 128>}]} {
    %c0_i32 = arith.constant 0 : i32
    %0 = arith.cmpi eq, %arg1, %c0_i32 : i32
    %1 = arith.extui %0 : i1 to i32
    %c0_i32_0 = arith.constant 0 : i32
    %2 = arith.cmpi ne, %1, %c0_i32_0 : i32
    scf.if %2 {
      %cst_17 = arith.constant 0.000000e+00 : f32
      %90 = vector.broadcast %cst_17 : f32 to vector<128x128xf32>
      %c0_18 = arith.constant 0 : index
      %c0_19 = arith.constant 0 : index
      %91 = vector.load %arg8[%c0_18, %c0_19] : memref<128x128xf32, #tpu.memory_space<vmem>>, vector<128x128xf32>
      tpu.vector_store %arg8[%c0_18, %c0_19], %90 {strides = array<i32>} : memref<128x128xf32, #tpu.memory_space<vmem>>, vector<128x128xf32>,
    } else {
    }
    %c0 = arith.constant 0 : index
    %c0_1 = arith.constant 0 : index
    %3 = vector.load %arg2[%c0, %c0_1] : memref<128x4xf32, #tpu.memory_space<vmem>>, vector<128x4xf32>
    %4 = vector.extract_strided_slice %3 {offsets = [0, 0], sizes = [128, 1], strides = [1, 1]} : vector<128x4xf32> to vector<128x1xf32>
    %5 = vector.extract_strided_slice %3 {offsets = [0, 1], sizes = [128, 1], strides = [1, 1]} : vector<128x4xf32> to vector<128x1xf32>
    %6 = arith.maximumf %4, %5 : vector<128x1xf32>
    %7 = vector.extract_strided_slice %3 {offsets = [0, 2], sizes = [128, 1], strides = [1, 1]} : vector<128x4xf32> to vector<128x1xf32>
    %8 = arith.maximumf %6, %7 : vector<128x1xf32>
    %9 = vector.extract_strided_slice %3 {offsets = [0, 3], sizes = [128, 1], strides = [1, 1]} : vector<128x4xf32> to vector<128x1xf32>
    %10 = arith.maximumf %8, %9 : vector<128x1xf32>
    %11 = vector.extract_strided_slice %3 {offsets = [0, 0], sizes = [128, 1], strides = [1, 1]} : vector<128x4xf32> to vector<128x1xf32>
    %12 = arith.subf %11, %10 : vector<128x1xf32>
    %13 = math.exp %12 : vector<128x1xf32>
    %14 = vector.extract_strided_slice %3 {offsets = [0, 1], sizes = [128, 1], strides = [1, 1]} : vector<128x4xf32> to vector<128x1xf32>
    %15 = arith.subf %14, %10 : vector<128x1xf32>
    %16 = math.exp %15 : vector<128x1xf32>
    %17 = arith.addf %13, %16 : vector<128x1xf32>
    %18 = vector.extract_strided_slice %3 {offsets = [0, 2], sizes = [128, 1], strides = [1, 1]} : vector<128x4xf32> to vector<128x1xf32>
    %19 = arith.subf %18, %10 : vector<128x1xf32>
    %20 = math.exp %19 : vector<128x1xf32>
    %21 = arith.addf %17, %20 : vector<128x1xf32>
    %22 = vector.extract_strided_slice %3 {offsets = [0, 3], sizes = [128, 1], strides = [1, 1]} : vector<128x4xf32> to vector<128x1xf32>
    %23 = arith.subf %22, %10 : vector<128x1xf32>
    %24 = math.exp %23 : vector<128x1xf32>
    %25 = arith.addf %21, %24 : vector<128x1xf32>
    %26 = vector.extract_strided_slice %3 {offsets = [0, 1], sizes = [128, 1], strides = [1, 1]} : vector<128x4xf32> to vector<128x1xf32>
    %27 = arith.subf %26, %10 : vector<128x1xf32>
    %28 = math.log %25 : vector<128x1xf32>
    %29 = arith.subf %27, %28 : vector<128x1xf32>
    %c0_2 = arith.constant 0 : index
    %c0_3 = arith.constant 0 : index
    %30 = vector.load %arg3[%c0_2, %c0_3] : memref<4x128xf32, #tpu.memory_space<vmem>>, vector<4x128xf32>
    %31 = vector.extract_strided_slice %30 {offsets = [0, 0], sizes = [1, 128], strides = [1, 1]} : vector<4x128xf32> to vector<1x128xf32>
    %32 = vector.extract_strided_slice %30 {offsets = [1, 0], sizes = [1, 128], strides = [1, 1]} : vector<4x128xf32> to vector<1x128xf32>
    %33 = arith.maximumf %31, %32 : vector<1x128xf32>
    %34 = vector.extract_strided_slice %30 {offsets = [2, 0], sizes = [1, 128], strides = [1, 1]} : vector<4x128xf32> to vector<1x128xf32>
    %35 = arith.maximumf %33, %34 : vector<1x128xf32>
    %36 = vector.extract_strided_slice %30 {offsets = [3, 0], sizes = [1, 128], strides = [1, 1]} : vector<4x128xf32> to vector<1x128xf32>
    %37 = arith.maximumf %35, %36 : vector<1x128xf32>
    %38 = vector.extract_strided_slice %30 {offsets = [0, 0], sizes = [1, 128], strides = [1, 1]} : vector<4x128xf32> to vector<1x128xf32>
    %39 = arith.subf %38, %37 : vector<1x128xf32>
    %40 = math.exp %39 : vector<1x128xf32>
    %41 = vector.extract_strided_slice %30 {offsets = [1, 0], sizes = [1, 128], strides = [1, 1]} : vector<4x128xf32> to vector<1x128xf32>
    %42 = arith.subf %41, %37 : vector<1x128xf32>
    %43 = math.exp %42 : vector<1x128xf32>
    %44 = arith.addf %40, %43 : vector<1x128xf32>
    %45 = vector.extract_strided_slice %30 {offsets = [2, 0], sizes = [1, 128], strides = [1, 1]} : vector<4x128xf32> to vector<1x128xf32>
    %46 = arith.subf %45, %37 : vector<1x128xf32>
    %47 = math.exp %46 : vector<1x128xf32>
    %48 = arith.addf %44, %47 : vector<1x128xf32>
    %49 = vector.extract_strided_slice %30 {offsets = [3, 0], sizes = [1, 128], strides = [1, 1]} : vector<4x128xf32> to vector<1x128xf32>
    %50 = arith.subf %49, %37 : vector<1x128xf32>
    %51 = math.exp %50 : vector<1x128xf32>
    %52 = arith.addf %48, %51 : vector<1x128xf32>
    %53 = vector.extract_strided_slice %30 {offsets = [1, 0], sizes = [1, 128], strides = [1, 1]} : vector<4x128xf32> to vector<1x128xf32>
    %54 = arith.subf %53, %37 : vector<1x128xf32>
    %55 = math.log %52 : vector<1x128xf32>
    %56 = arith.subf %54, %55 : vector<1x128xf32>
    %57 = vector.broadcast %56 : vector<1x128xf32> to vector<128x128xf32>
    %58 = vector.broadcast %29 : vector<128x1xf32> to vector<128x128xf32>
    %59 = arith.cmpf oge, %57, %58 : vector<128x128xf32>
    %60 = arith.extui %59 : vector<128x128xi1> to vector<128x128xi32>
    %61 = arith.sitofp %60 : vector<128x128xi32> to vector<128x128xf32>
    %62 = arith.truncf %61 : vector<128x128xf32> to vector<128x128xbf16>
    %c0_4 = arith.constant 0 : index
    %c0_5 = arith.constant 0 : index
    %63 = vector.load %arg6[%c0_4, %c0_5] : memref<128x1xf32, #tpu.memory_space<vmem>>, vector<128x1xf32>
    %c0_6 = arith.constant 0 : index
    %c0_7 = arith.constant 0 : index
    %64 = vector.load %arg5[%c0_6, %c0_7] : memref<128x1xi32, #tpu.memory_space<vmem>>, vector<128x1xi32>
    %c1_i32 = arith.constant 1 : i32
    %65 = vector.broadcast %c1_i32 : i32 to vector<128x1xi32>
    %66 = arith.cmpi eq, %64, %65 : vector<128x1xi32>
    %67 = arith.extui %66 : vector<128x1xi1> to vector<128x1xi32>
    %68 = arith.sitofp %67 : vector<128x1xi32> to vector<128x1xf32>
    %69 = arith.mulf %68, %63 : vector<128x1xf32>
    %70 = tpu.iota {dimensions = array<i32: 1>} : vector<128x128xi32>
    %c0_i32_8 = arith.constant 0 : i32
    %71 = vector.broadcast %c0_i32_8 : i32 to vector<128x128xi32>
    %72 = arith.cmpi eq, %70, %71 : vector<128x128xi32>
    %c1_i32_9 = arith.constant 1 : i32
    %73 = vector.broadcast %c1_i32_9 : i32 to vector<128x128xi32>
    %74 = arith.cmpi eq, %70, %73 : vector<128x128xi32>
    %cst = arith.constant 0.000000e+00 : f32
    %75 = vector.shape_cast %69 : vector<128x1xf32> to vector<128x1xf32>
    %76 = vector.broadcast %75 : vector<128x1xf32> to vector<128x128xf32>
    %77 = vector.broadcast %cst : f32 to vector<128x128xf32>
    %78 = arith.select %74, %76, %77 : vector<128x128xi1>, vector<128x128xf32>
    %79 = vector.shape_cast %63 : vector<128x1xf32> to vector<128x1xf32>
    %80 = vector.broadcast %79 : vector<128x1xf32> to vector<128x128xf32>
    %81 = arith.select %72, %80, %78 : vector<128x128xi1>, vector<128x128xf32>
    %82 = arith.truncf %81 : vector<128x128xf32> to vector<128x128xbf16>
    %c0_10 = arith.constant 0 : index
    %c0_11 = arith.constant 0 : index
    %83 = vector.load %arg8[%c0_10, %c0_11] : memref<128x128xf32, #tpu.memory_space<vmem>>, vector<128x128xf32>
    %cst_12 = arith.constant dense<0.000000e+00> : vector<128x128xf32>
    %84 = tpu.matmul %62, %82, %cst_12 {dimension_numbers = #tpu.dot_dimension_numbers<[1], [0], [0], [1], [0, 0, 1, 1], [], []>} : vector<128x128xbf16>, vector<128x128xbf16>, vector<128x128xf32> -> vector<128x128xf32>
    %85 = arith.addf %83, %84 : vector<128x128xf32>
    %c0_13 = arith.constant 0 : index
    %c0_14 = arith.constant 0 : index
    %86 = vector.load %arg8[%c0_13, %c0_14] : memref<128x128xf32, #tpu.memory_space<vmem>>, vector<128x128xf32>
    tpu.vector_store %arg8[%c0_13, %c0_14], %85 {strides = array<i32>} : memref<128x128xf32, #tpu.memory_space<vmem>>, vector<128x128xf32>,
    %c1_i32_15 = arith.constant 1 : i32
    %87 = arith.cmpi eq, %arg1, %c1_i32_15 : i32
    %88 = arith.extui %87 : i1 to i32
    %c0_i32_16 = arith.constant 0 : i32
    %89 = arith.cmpi ne, %88, %c0_i32_16 : i32
    scf.if %89 {
      %c0_17 = arith.constant 0 : index
      %c0_18 = arith.constant 0 : index
      %90 = vector.load %arg8[%c0_17, %c0_18] : memref<128x128xf32, #tpu.memory_space<vmem>>, vector<128x128xf32>
      %91 = vector.extract_strided_slice %90 {offsets = [0, 0], sizes = [128, 1], strides = [1, 1]} : vector<128x128xf32> to vector<128x1xf32>
      %92 = vector.extract_strided_slice %90 {offsets = [0, 1], sizes = [128, 1], strides = [1, 1]} : vector<128x128xf32> to vector<128x1xf32>
      %c0_19 = arith.constant 0 : index
      %c0_20 = arith.constant 0 : index
      %93 = vector.load %arg4[%c0_19, %c0_20] : memref<128x1xi32, #tpu.memory_space<vmem>>, vector<128x1xi32>
      %c1_i32_21 = arith.constant 1 : i32
      %94 = vector.broadcast %c1_i32_21 : i32 to vector<128x1xi32>
      %95 = arith.cmpi eq, %93, %94 : vector<128x1xi32>
      %96 = arith.extui %95 : vector<128x1xi1> to vector<128x1xi32>
      %97 = arith.sitofp %96 : vector<128x1xi32> to vector<128x1xf32>
      %cst_22 = arith.constant 1.000000e+00 : f32
      %98 = vector.broadcast %cst_22 : f32 to vector<128x1xf32>
      %99 = arith.maximumf %91, %98 : vector<128x1xf32>
      %100 = arith.divf %92, %99 : vector<128x1xf32>
      %cst_23 = arith.constant 1.000000e+00 : f32
      %101 = vector.broadcast %cst_23 : f32 to vector<128x1xf32>
      %102 = arith.cmpf ogt, %91, %101 : vector<128x1xf32>
      %cst_24 = arith.constant 1.000000e+00 : f32
      %103 = vector.broadcast %cst_24 : f32 to vector<128x1xf32>
      %104 = arith.subf %92, %103 : vector<128x1xf32>
      %cst_25 = arith.constant 1.000000e+00 : f32
      %105 = vector.broadcast %cst_25 : f32 to vector<128x1xf32>
      %106 = arith.subf %91, %105 : vector<128x1xf32>
      %cst_26 = arith.constant 1.000000e+00 : f32
      %107 = vector.broadcast %cst_26 : f32 to vector<128x1xf32>
      %108 = arith.maximumf %106, %107 : vector<128x1xf32>
      %109 = arith.divf %104, %108 : vector<128x1xf32>
      %cst_27 = arith.constant 1.000000e+00 : f32
      %110 = vector.broadcast %cst_27 : f32 to vector<128x1xf32>
      %111 = arith.select %102, %109, %110 : vector<128x1xi1>, vector<128x1xf32>
      %cst_28 = arith.constant 5.000000e-01 : f32
      %112 = vector.broadcast %cst_28 : f32 to vector<128x1xf32>
      %113 = arith.mulf %97, %112 : vector<128x1xf32>
      %114 = arith.addf %100, %111 : vector<128x1xf32>
      %115 = arith.mulf %113, %114 : vector<128x1xf32>
      %116 = vector.shape_cast %115 : vector<128x1xf32> to vector<1x128x1xf32>
      %cst_29 = arith.constant dense<0.000000e+00> : vector<1xf32>
      %117 = vector.multi_reduction <add>, %116, %cst_29 [1, 2] : vector<1x128x1xf32> to vector<1xf32>
      %118 = vector.shape_cast %117 : vector<1xf32> to vector<1x1x1xf32>
      %119 = vector.extract %118[0, 0, 0] : f32 from vector<1x1x1xf32>
      %120 = vector.broadcast %119 : f32 to vector<1x1xf32>
      %121 = vector.shape_cast %97 : vector<128x1xf32> to vector<1x128x1xf32>
      %cst_30 = arith.constant dense<0.000000e+00> : vector<1xf32>
      %122 = vector.multi_reduction <add>, %121, %cst_30 [1, 2] : vector<1x128x1xf32> to vector<1xf32>
      %123 = vector.shape_cast %122 : vector<1xf32> to vector<1x1x1xf32>
      %124 = vector.extract %123[0, 0, 0] : f32 from vector<1x1x1xf32>
      %125 = vector.broadcast %124 : f32 to vector<1x1xf32>
      %126 = tpu.iota {dimensions = array<i32: 0>} : vector<8x128xi32>
      %127 = tpu.iota {dimensions = array<i32: 1>} : vector<8x128xi32>
      %c0_i32_31 = arith.constant 0 : i32
      %128 = vector.broadcast %c0_i32_31 : i32 to vector<8x128xi32>
      %129 = arith.cmpi eq, %126, %128 : vector<8x128xi32>
      %c0_i32_32 = arith.constant 0 : i32
      %130 = vector.broadcast %c0_i32_32 : i32 to vector<8x128xi32>
      %131 = arith.cmpi eq, %127, %130 : vector<8x128xi32>
      %132 = arith.andi %129, %131 : vector<8x128xi1>
      %c0_i32_33 = arith.constant 0 : i32
      %133 = vector.broadcast %c0_i32_33 : i32 to vector<8x128xi32>
      %134 = arith.cmpi eq, %126, %133 : vector<8x128xi32>
      %c1_i32_34 = arith.constant 1 : i32
      %135 = vector.broadcast %c1_i32_34 : i32 to vector<8x128xi32>
      %136 = arith.cmpi eq, %127, %135 : vector<8x128xi32>
      %137 = arith.andi %134, %136 : vector<8x128xi1>
      %cst_35 = arith.constant 0.000000e+00 : f32
      %138 = vector.shape_cast %125 : vector<1x1xf32> to vector<1x1xf32>
      %139 = vector.broadcast %138 : vector<1x1xf32> to vector<8x128xf32>
      %140 = vector.broadcast %cst_35 : f32 to vector<8x128xf32>
      %141 = arith.select %137, %139, %140 : vector<8x128xi1>, vector<8x128xf32>
      %142 = vector.shape_cast %120 : vector<1x1xf32> to vector<1x1xf32>
      %143 = vector.broadcast %142 : vector<1x1xf32> to vector<8x128xf32>
      %144 = arith.select %132, %143, %141 : vector<8x128xi1>, vector<8x128xf32>
      %c0_36 = arith.constant 0 : index
      %c0_37 = arith.constant 0 : index
      %145 = vector.load %arg7[%c0_36, %c0_37] : memref<8x128xf32, #tpu.memory_space<vmem>>, vector<8x128xf32>
      tpu.vector_store %arg7[%c0_36, %c0_37], %144 {strides = array<i32>} : memref<8x128xf32, #tpu.memory_space<vmem>>, vector<8x128xf32>,
    } else {
    }
    return
  }
  func.func @transform_0(%arg0: i32, %arg1: i32) -> (i32, i32) {
    %c0_i32 = arith.constant 0 : i32
    %c0_i32_0 = arith.constant 0 : i32
    return %arg0, %c0_i32 : i32, i32
  }
  func.func @transform_1(%arg0: i32, %arg1: i32) -> (i32, i32) {
    %c0_i32 = arith.constant 0 : i32
    %c0_i32_0 = arith.constant 0 : i32
    return %c0_i32, %arg1 : i32, i32
  }
  func.func @transform_2(%arg0: i32, %arg1: i32) -> (i32, i32) {
    %c0_i32 = arith.constant 0 : i32
    %c0_i32_0 = arith.constant 0 : i32
    return %arg0, %c0_i32 : i32, i32
  }
  func.func @transform_3(%arg0: i32, %arg1: i32) -> (i32, i32) {
    %c0_i32 = arith.constant 0 : i32
    %c0_i32_0 = arith.constant 0 : i32
    return %arg1, %c0_i32 : i32, i32
  }
  func.func @transform_4(%arg0: i32, %arg1: i32) -> (i32, i32) {
    %c0_i32 = arith.constant 0 : i32
    %c0_i32_0 = arith.constant 0 : i32
    return %arg1, %c0_i32 : i32, i32
  }
  func.func @transform_5(%arg0: i32, %arg1: i32) -> (i32, i32) {
    %c0_i32 = arith.constant 0 : i32
    %c0_i32_0 = arith.constant 0 : i32
    return %arg0, %c0_i32 : i32, i32
  }
}

</mosaic_0001>

<bundles_post_ra>
// kernel: pr_auc.1
= control target key start
LH: loop header
LB: loop body
LE: loop exit
PB: predicated region body
PF: predicated region fallthrough
CT: control target
= control target key end

     0   :  { %s3341_s18 = smov 0   ;;  %s3343_s19 = smov 0   ;;  %s4498_s0 = inlined_call_operand.vmem [shape: f32[256,4], index: 0, kind: input, shape index: {}]   ;;  %s4499_s1 = inlined_call_operand.vmem [shape: f32[4,256], index: 1, kind: input, shape index: {}]   ;;  %s4500_s2 = inlined_call_operand.vmem [shape: s32[256,1], index: 2, kind: input, shape index: {}, may-alias: {2,3}]   ;;  %s4501_s3 = inlined_call_operand.vmem [shape: s32[256,1], index: 3, kind: input, shape index: {}, may-alias: {2,3}]   ;;  %s4502_s4 = inlined_call_operand.vmem [shape: f32[256,1], index: 4, kind: input, shape index: {}]   ;;  %s4503_s5 = inlined_call_operand.vmem [shape: f32[16,128], index: 5, kind: output, shape index: {}]  }
   0x1   :  { %s3345_s20 = smov 0   ;;  %s3347_s21 = smov 0  }
   0x2   :  { %s3349_s22 = smov 0  }
   0x3 LB: > { %s24_s23 = sadd.s32 1, %s3287_s20  ;;  %s27_s24 = sadd.s32 1, %s3291_s21  ;;  %s3295_s22 = sphi %s3349_s22, %s15_s22   ;;  %s3291_s21 = sphi %s3347_s21, %s4507_s21   ;;  %s3287_s20 = sphi %s3345_s20, %s4506_s20   ;;  %s3283_s19 = sphi %s3343_s19, %s4505_s19   ;;  %s3279_s18 = sphi %s3341_s18, %s4504_s18  }
   0x4   : > { %p25_p0 = scmp.ge.s32.totalorder %s24_s23, 2  ;;  %p2705_p1 = scmp.ge.s32.totalorder %s3295_s22, 1 }
   0x5   : > { %p242_p2 = scmp.lt.s32.totalorder %s3295_s22, 5 }
   0x6   : > { %s4509_s23 = smov (%p25_p0, %s24_s23), 0  ;;  %s4511_s24 = smov (!%p25_p0, %s27_s24), %s3291_s21 }
   0x7   : > { %p243_p3 = pnand %p2705_p1, %p242_p2  ;;  %p29_p4 = scmp.ge.s32.totalorder %s4511_s24, 2 }
   0x8   : > { %s2706_s25 = sshll.u32 (!%p243_p3), %s3283_s19, 4  ;;  %p294_p5 = scmp.lt.s32.totalorder (!%p243_p3), %s3279_s18, 1 }
   0x9   : > { %s4513_s24 = smov (%p29_p4, %s4511_s24), 0  ;;  %246 = sbr.rel (%p243_p3) target bundleno = 1726 (0x6be), region = 40 }
   0xa   : > { %p289_p6 = scmp.lt.s32.totalorder (!%p243_p3), %s2706_s25, 31  ;;  %s2711_s26 = sshll.u32 (!%p243_p3), %s3279_s18, 4 }
   0xb   : > { %p305_p7 = scmp.lt.s32.totalorder (!%p243_p3), %s2711_s26, 31  ;;  %p316_p8 = scmp.lt.s32.totalorder (!%p243_p3), %s3283_s19, 1 }
   0xc   : > { %p2716_p9 = scmp.ne.s32.totalorder (!%p243_p3), %s3279_s18, 0 }
   0xe   : > { %s295_s27 = scalar_select %p294_p5, %s3279_s18, 1 }
   0xf   : > { %s4515_s25 = smov (!%p289_p6, %s2706_s25), 31  ;;  %s4517_s26 = smov (!%p305_p7, %s2711_s26), 31 }
  0x10   : > { %s2708_s28 = sshll.u32 %s295_s27, 2  ;;  %s2707_s29 = sshll.u32 %s4515_s25, 3 }
  0x11   : > { %s3382_s7 = scalar_lea.vmem %s4499_s1, %s2708_s28  ;;  %s3387_s10 = scalar_lea.vmem %s4498_s0, %s2707_s29 }
  0x12   : > { %s3392_s13 = scalar_lea.vmem %s4500_s2, %s2707_s29  ;;  %s2712_s14 = sshll.u32 %s4517_s26, 3 }
  0x13   : > { %s3398_s17 = scalar_lea.vmem %s4501_s3, %s2712_s14  ;;  %s3403_s28 = scalar_lea.vmem %s4502_s4, %s2712_s14 }
  0x14   : > { %s4519_s19 = smov (!%p316_p8, %s3283_s19), 1  ;;  %324 = sbr.rel (%p2716_p9) target bundleno = 34 (0x22), region = 44 }
  0x15   : > { %s2715_s30 = sshll.u32 %s4519_s19, 3 }
  0x16   : > { %s3409_s29 = scalar_lea.vmem %s4503_s5, %s2715_s30 }
  0x19   : > { %v3297_v0 = vmov 0.0  }
  0x1a   : > { %325 = vst [vmem:[#allocation2 + $0x30] sm:$0xff] %v3297_v0  ;;  %326 = vst [vmem:[#allocation2] sm:$0xff] %v3297_v0 }
  0x1b   : > { %327 = vst [vmem:[#allocation2 + $0x58] sm:$0xff] %v3297_v0  ;;  %328 = vst [vmem:[#allocation2 + $0x18] sm:$0xff] %v3297_v0 }
  0x1c   : > { %329 = vst [vmem:[#allocation2 + $0x50] sm:$0xff] %v3297_v0  ;;  %330 = vst [vmem:[#allocation2 + $0x68] sm:$0xff] %v3297_v0 }
  0x1d   : > { %331 = vst [vmem:[#allocation2 + $0x8] sm:$0xff] %v3297_v0  ;;  %332 = vst [vmem:[#allocation2 + $0x48] sm:$0xff] %v3297_v0 }
  0x1e   : > { %333 = vst [vmem:[#allocation2 + $0x40] sm:$0xff] %v3297_v0  ;;  %334 = vst [vmem:[#allocation2 + $0x20] sm:$0xff] %v3297_v0 }
  0x1f   : > { %335 = vst [vmem:[#allocation2 + $0x10] sm:$0xff] %v3297_v0  ;;  %336 = vst [vmem:[#allocation2 + $0x38] sm:$0xff] %v3297_v0 }
  0x20   : > { %337 = vst [vmem:[#allocation2 + $0x60] sm:$0xff] %v3297_v0  ;;  %338 = vst [vmem:[#allocation2 + $0x70] sm:$0xff] %v3297_v0 }
  0x21   : > { %339 = vst [vmem:[#allocation2 + $0x78] sm:$0xff] %v3297_v0  ;;  %340 = vst [vmem:[#allocation2 + $0x28] sm:$0xff] %v3297_v0 }
  0x22 PF: > { %v3413_v1 = vld [vmem:[%s3387_s10 + $0x40] sm:$0xff]  ;;  %s3298_s19 = smov 127   ;;  %v3423_v3 = vld [vmem:[%s3387_s10 + $0x48] sm:$0xff]  ;;  %v3433_v5 = vld [vmem:[%s3387_s10 + $0x18] sm:$0xff]  ;;  %s3299_s26 = smov 126  }
  0x23   : > { %v3416_v2 = vld [vmem:[%s3387_s10] sm:$0xff]  ;;  %389 = vrot.lane.b32.xlu1 %v3413_v1, %s3298_s19  ;;  %v3426_v4 = vld [vmem:[%s3387_s10 + $0x8] sm:$0xff]  ;;  %v3436_v6 = vld [vmem:[%s3387_s10 + $0x10] sm:$0xff]  ;;  %s3300_s9 = smov 125   ;;  %s3301_s11 = smov 1  }
  0x24   : > { %373 = vrot.lane.b32.xlu0 %v3416_v2, %s3298_s19  ;;  %v3443_v7 = vld [vmem:[%s3387_s10 + $0x58] sm:$0xff]  ;;  %v3446_v8 = vld [vmem:[%s3387_s10 + $0x50] sm:$0xff]  ;;  %v3485_v9 = vld [vmem:[%s3387_s10 + $0x28] sm:$0xff]  ;;  %s3302_s12 = smov 2   ;;  %s3303_s14 = smov 3  }
  0x25   : > { %v3488_v10 = vld [vmem:[%s3387_s10 + $0x20] sm:$0xff]  ;;  %v3495_v11 = vld [vmem:[%s3387_s10 + $0x68] sm:$0xff]  ;;  %v3505_v13 = vld [vmem:[%s3387_s10 + $0x38] sm:$0xff]  ;;  %p2765_p10 = scmp.ne.s32.totalorder %s3279_s18, 1 }
  0x26   : > { %v3498_v12 = vld [vmem:[%s3387_s10 + $0x60] sm:$0xff]  ;;  %v3508_v14 = vld [vmem:[%s3387_s10 + $0x30] sm:$0xff]  ;;  %v3515_v15 = vld [vmem:[%s3387_s10 + $0x78] sm:$0xff]  ;;  %s3308_s18 = smov (!%p2765_p10), 1  }
  0x27   : > { %391 = vrot.lane.b32.xlu1 %v3423_v3, %s3298_s19  ;;  %v3518_v16 = vld [vmem:[%s3387_s10 + $0x70] sm:$0xff] }
  0x28   : > { %375 = vrot.lane.b32.xlu0 %v3426_v4, %s3298_s19 }
  0x2b   : > { %379 = vrot.lane.b32.xlu1 %v3433_v5, %s3298_s19 }
  0x2c   : > { %377 = vrot.lane.b32.xlu0 %v3436_v6, %s3298_s19 }
  0x2f   : > { %395 = vrot.lane.b32.xlu1 %v3443_v7, %s3298_s19 }
  0x30   : > { %393 = vrot.lane.b32.xlu0 %v3446_v8, %s3298_s19 }
  0x33   : > { %439 = vrot.lane.b32.xlu1 %v3426_v4, %s3299_s26 }
  0x34   : > { %437 = vrot.lane.b32.xlu0 %v3416_v2, %s3299_s26 }
  0x37   : > { %455 = vrot.lane.b32.xlu1 %v3423_v3, %s3299_s26 }
  0x38   : > { %453 = vrot.lane.b32.xlu0 %v3413_v1, %s3299_s26 }
  0x3b   : > { %443 = vrot.lane.b32.xlu1 %v3433_v5, %s3299_s26 }
  0x3c   : > { %441 = vrot.lane.b32.xlu0 %v3436_v6, %s3299_s26 }
  0x3f   : > { %459 = vrot.lane.b32.xlu1 %v3443_v7, %s3299_s26 }
  0x40   : > { %457 = vrot.lane.b32.xlu0 %v3446_v8, %s3299_s26 }
  0x43   : > { %503 = vrot.lane.b32.xlu1 %v3426_v4, %s3300_s9 }
  0x44   : > { %501 = vrot.lane.b32.xlu0 %v3416_v2, %s3300_s9 }
  0x47   : > { %519 = vrot.lane.b32.xlu1 %v3423_v3, %s3300_s9 }
  0x48   : > { %517 = vrot.lane.b32.xlu0 %v3413_v1, %s3300_s9 }
  0x4b   : > { %507 = vrot.lane.b32.xlu1 %v3433_v5, %s3300_s9 }
  0x4c   : > { %505 = vrot.lane.b32.xlu0 %v3436_v6, %s3300_s9 }
  0x4f   : > { %523 = vrot.lane.b32.xlu1 %v3443_v7, %s3300_s9 }
  0x50   : > { %521 = vrot.lane.b32.xlu0 %v3446_v8, %s3300_s9 }
  0x53   : > { %383 = vrot.lane.b32.xlu1 %v3485_v9, %s3298_s19 }
  0x54   : > { %381 = vrot.lane.b32.xlu0 %v3488_v10, %s3298_s19 }
  0x57   : > { %399 = vrot.lane.b32.xlu1 %v3495_v11, %s3298_s19 }
  0x58   : > { %397 = vrot.lane.b32.xlu0 %v3498_v12, %s3298_s19 }
  0x5b   : > { %387 = vrot.lane.b32.xlu1 %v3505_v13, %s3298_s19 }
  0x5c   : > { %385 = vrot.lane.b32.xlu0 %v3508_v14, %s3298_s19 }
  0x5f   : > { %403 = vrot.lane.b32.xlu1 %v3515_v15, %s3298_s19 }
  0x60   : > { %401 = vrot.lane.b32.xlu0 %v3518_v16, %s3298_s19 }
  0x63   : > { %447 = vrot.lane.b32.xlu1 %v3485_v9, %s3299_s26 }
  0x64   : > { %445 = vrot.lane.b32.xlu0 %v3488_v10, %s3299_s26 }
  0x67   : > { %463 = vrot.lane.b32.xlu1 %v3495_v11, %s3299_s26 }
  0x68   : > { %461 = vrot.lane.b32.xlu0 %v3498_v12, %s3299_s26 }
  0x6b   : > { %451 = vrot.lane.b32.xlu1 %v3505_v13, %s3299_s26 }
  0x6c   : > { %449 = vrot.lane.b32.xlu0 %v3508_v14, %s3299_s26 }
  0x6f   : > { %467 = vrot.lane.b32.xlu1 %v3515_v15, %s3299_s26 }
  0x70   : > { %465 = vrot.lane.b32.xlu0 %v3518_v16, %s3299_s26 }
  0x73   : > { %511 = vrot.lane.b32.xlu1 %v3485_v9, %s3300_s9 }
  0x74   : > { %509 = vrot.lane.b32.xlu0 %v3488_v10, %s3300_s9 }
  0x77   : > { %527 = vrot.lane.b32.xlu1 %v3495_v11, %s3300_s9 }
  0x78   : > { %525 = vrot.lane.b32.xlu0 %v3498_v12, %s3300_s9 }
  0x7b   : > { %515 = vrot.lane.b32.xlu1 %v3505_v13, %s3300_s9 }
  0x7c   : > { %513 = vrot.lane.b32.xlu0 %v3508_v14, %s3300_s9 }
  0x7f   : > { %531 = vrot.lane.b32.xlu1 %v3515_v15, %s3300_s9 }
  0x80   : > { %529 = vrot.lane.b32.xlu0 %v3518_v16, %s3300_s9 }
  0x95   : > { %v390_v17 = vpop.permute.xlu1 %389 }
  0x96   : > { %v374_v18 = vpop.permute.xlu0 %373  ;;  %v429_v39 = vmax.f32 %v3413_v1, %v390_v17 }
  0x97   : > { %v421_v33 = vmax.f32 %v3416_v2, %v374_v18 }
  0x99   : > { %v392_v19 = vpop.permute.xlu1 %391 }
  0x9a   : > { %v376_v20 = vpop.permute.xlu0 %375  ;;  %v430_v40 = vmax.f32 %v3423_v3, %v392_v19 }
  0x9b   : > { %v422_v34 = vmax.f32 %v3426_v4, %v376_v20 }
  0x9d   : > { %v380_v21 = vpop.permute.xlu1 %379 }
  0x9e   : > { %v378_v22 = vpop.permute.xlu0 %377  ;;  %v424_v47 = vmax.f32 %v3433_v5, %v380_v21 }
  0x9f   : > { %v423_v48 = vmax.f32 %v3436_v6, %v378_v22 }
  0xa1   : > { %v396_v23 = vpop.permute.xlu1 %395 }
  0xa2   : > { %v394_v24 = vpop.permute.xlu0 %393  ;;  %v432_v55 = vmax.f32 %v3443_v7, %v396_v23 }
  0xa3   : > { %v431_v56 = vmax.f32 %v3446_v8, %v394_v24 }
  0xa5   : > { %v440_v25 = vpop.permute.xlu1 %439 }
  0xa6   : > { %v438_v26 = vpop.permute.xlu0 %437  ;;  %v486_v35 = vmax.f32 %v422_v34, %v440_v25 }
  0xa7   : > { %v485_v36 = vmax.f32 %v421_v33, %v438_v26 }
  0xa9   : > { %v456_v27 = vpop.permute.xlu1 %455 }
  0xaa   : > { %v454_v28 = vpop.permute.xlu0 %453  ;;  %v494_v43 = vmax.f32 %v430_v40, %v456_v27 }
  0xab   : > { %v493_v44 = vmax.f32 %v429_v39, %v454_v28 }
  0xad   : > { %v444_v29 = vpop.permute.xlu1 %443 }
  0xae   : > { %v442_v30 = vpop.permute.xlu0 %441  ;;  %v488_v51 = vmax.f32 %v424_v47, %v444_v29 }
  0xaf   : > { %v487_v52 = vmax.f32 %v423_v48, %v442_v30 }
  0xb1   : > { %v460_v31 = vpop.permute.xlu1 %459 }
  0xb2   : > { %v458_v32 = vpop.permute.xlu0 %457  ;;  %v496_v59 = vmax.f32 %v432_v55, %v460_v31 }
  0xb3   : > { %v495_v60 = vmax.f32 %v431_v56, %v458_v32 }
  0xb5   : > { %v504_v37 = vpop.permute.xlu1 %503 }
  0xb6   : > { %v502_v38 = vpop.permute.xlu0 %501  ;;  %v3560_v41 = vmax.f32 %v486_v35, %v504_v37 }
  0xb7   : > { %v3562_v42 = vmax.f32 %v485_v36, %v502_v38 }
  0xb8   : > { %631 = vrot.lane.b32.xlu1 %v3560_v41, %s3301_s11 }
  0xb9   : > { %629 = vrot.lane.b32.xlu0 %v3562_v42, %s3301_s11  ;;  %v520_v45 = vpop.permute.xlu1 %519 }
  0xba   : > { %v518_v46 = vpop.permute.xlu0 %517  ;;  %v3570_v49 = vmax.f32 %v494_v43, %v520_v45 }
  0xbb   : > { %v3572_v50 = vmax.f32 %v493_v44, %v518_v46 }
  0xbc   : > { %647 = vrot.lane.b32.xlu1 %v3570_v49, %s3301_s11 }
  0xbd   : > { %645 = vrot.lane.b32.xlu0 %v3572_v50, %s3301_s11  ;;  %v508_v53 = vpop.permute.xlu1 %507 }
  0xbe   : > { %v506_v54 = vpop.permute.xlu0 %505  ;;  %v3580_v57 = vmax.f32 %v488_v51, %v508_v53 }
  0xbf   : > { %v3582_v58 = vmax.f32 %v487_v52, %v506_v54 }
  0xc0   : > { %635 = vrot.lane.b32.xlu1 %v3580_v57, %s3301_s11 }
  0xc1   : > { %633 = vrot.lane.b32.xlu0 %v3582_v58, %s3301_s11  ;;  %v524_v61 = vpop.permute.xlu1 %523 }
  0xc2   : > { %v522_v62 = vpop.permute.xlu0 %521  ;;  %v3588_v63 = vmax.f32 %v496_v59, %v524_v61 }
  0xc3   : > { %v3590_v0 = vmax.f32 %v495_v60, %v522_v62 }
  0xc4   : > { %651 = vrot.lane.b32.xlu1 %v3588_v63, %s3301_s11 }
  0xc5   : > { %649 = vrot.lane.b32.xlu0 %v3590_v0, %s3301_s11  ;;  %v384_v17 = vpop.permute.xlu1 %383 }
  0xc6   : > { %v382_v18 = vpop.permute.xlu0 %381  ;;  %v426_v33 = vmax.f32 %v3485_v9, %v384_v17 }
  0xc7   : > { %v425_v34 = vmax.f32 %v3488_v10, %v382_v18 }
  0xc8   : > { %807 = vrot.lane.b32.xlu1 %v3560_v41, %s3302_s12 }
  0xc9   : > { %805 = vrot.lane.b32.xlu0 %v3562_v42, %s3302_s12  ;;  %v400_v19 = vpop.permute.xlu1 %399 }
  0xca   : > { %v398_v20 = vpop.permute.xlu0 %397  ;;  %v434_v39 = vmax.f32 %v3495_v11, %v400_v19 }
  0xcb   : > { %v433_v40 = vmax.f32 %v3498_v12, %v398_v20 }
  0xcc   : > { %823 = vrot.lane.b32.xlu1 %v3570_v49, %s3302_s12 }
  0xcd   : > { %821 = vrot.lane.b32.xlu0 %v3572_v50, %s3302_s12  ;;  %v388_v21 = vpop.permute.xlu1 %387 }
  0xce   : > { %v386_v22 = vpop.permute.xlu0 %385  ;;  %v428_v51 = vmax.f32 %v3505_v13, %v388_v21 }
  0xcf   : > { %v427_v52 = vmax.f32 %v3508_v14, %v386_v22 }
  0xd0   : > { %811 = vrot.lane.b32.xlu1 %v3580_v57, %s3302_s12 }
  0xd1   : > { %809 = vrot.lane.b32.xlu0 %v3582_v58, %s3302_s12  ;;  %v404_v23 = vpop.permute.xlu1 %403 }
  0xd2   : > { %v402_v24 = vpop.permute.xlu0 %401  ;;  %v436_v61 = vmax.f32 %v3515_v15, %v404_v23 }
  0xd3   : > { %v435_v62 = vmax.f32 %v3518_v16, %v402_v24 }
  0xd4   : > { %827 = vrot.lane.b32.xlu1 %v3588_v63, %s3302_s12 }
  0xd5   : > { %825 = vrot.lane.b32.xlu0 %v3590_v0, %s3302_s12  ;;  %v448_v25 = vpop.permute.xlu1 %447 }
  0xd6   : > { %v446_v26 = vpop.permute.xlu0 %445  ;;  %v490_v35 = vmax.f32 %v426_v33, %v448_v25 }
  0xd7   : > { %v489_v36 = vmax.f32 %v425_v34, %v446_v26 }
  0xd8   : > { %983 = vrot.lane.b32.xlu1 %v3560_v41, %s3303_s14 }
  0xd9   : > { %981 = vrot.lane.b32.xlu0 %v3562_v42, %s3303_s14  ;;  %v464_v27 = vpop.permute.xlu1 %463 }
  0xda   : > { %v462_v28 = vpop.permute.xlu0 %461  ;;  %v498_v45 = vmax.f32 %v434_v39, %v464_v27 }
  0xdb   : > { %v497_v46 = vmax.f32 %v433_v40, %v462_v28 }
  0xdc   : > { %999 = vrot.lane.b32.xlu1 %v3570_v49, %s3303_s14 }
  0xdd   : > { %997 = vrot.lane.b32.xlu0 %v3572_v50, %s3303_s14  ;;  %v452_v29 = vpop.permute.xlu1 %451 }
  0xde   : > { %v450_v30 = vpop.permute.xlu0 %449  ;;  %v492_v55 = vmax.f32 %v428_v51, %v452_v29 }
  0xdf   : > { %v491_v56 = vmax.f32 %v427_v52, %v450_v30 }
  0xe0   : > { %987 = vrot.lane.b32.xlu1 %v3580_v57, %s3303_s14 }
  0xe1   : > { %985 = vrot.lane.b32.xlu0 %v3582_v58, %s3303_s14  ;;  %v468_v31 = vpop.permute.xlu1 %467 }
  0xe2   : > { %v466_v32 = vpop.permute.xlu0 %465  ;;  %v500_v19 = vmax.f32 %v436_v61, %v468_v31 }
  0xe3   : > { %v499_v20 = vmax.f32 %v435_v62, %v466_v32 }
  0xe4   : > { %1003 = vrot.lane.b32.xlu1 %v3588_v63, %s3303_s14 }
  0xe5   : > { %1001 = vrot.lane.b32.xlu0 %v3590_v0, %s3303_s14  ;;  %v512_v37 = vpop.permute.xlu1 %511 }
  0xe6   : > { %v510_v38 = vpop.permute.xlu0 %509  ;;  %v3632_v43 = vmax.f32 %v490_v35, %v512_v37 }
  0xe7   : > { %v3634_v44 = vmax.f32 %v489_v36, %v510_v38 }
  0xe8   : > { %639 = vrot.lane.b32.xlu1 %v3632_v43, %s3301_s11 }
  0xe9   : > { %637 = vrot.lane.b32.xlu0 %v3634_v44, %s3301_s11  ;;  %v528_v47 = vpop.permute.xlu1 %527 }
  0xea   : > { %v526_v48 = vpop.permute.xlu0 %525  ;;  %v3642_v53 = vmax.f32 %v498_v45, %v528_v47 }
  0xeb   : > { %v3644_v54 = vmax.f32 %v497_v46, %v526_v48 }
  0xec   : > { %655 = vrot.lane.b32.xlu1 %v3642_v53, %s3301_s11 }
  0xed   : > { %653 = vrot.lane.b32.xlu0 %v3644_v54, %s3301_s11  ;;  %v516_v59 = vpop.permute.xlu1 %515 }
  0xee   : > { %v514_v60 = vpop.permute.xlu0 %513  ;;  %v3652_v17 = vmax.f32 %v492_v55, %v516_v59 }
  0xef   : > { %v3654_v18 = vmax.f32 %v491_v56, %v514_v60 }
  0xf0   : > { %643 = vrot.lane.b32.xlu1 %v3652_v17, %s3301_s11 }
  0xf1   : > { %641 = vrot.lane.b32.xlu0 %v3654_v18, %s3301_s11  ;;  %v532_v21 = vpop.permute.xlu1 %531 }
  0xf2   : > { %v530_v22 = vpop.permute.xlu0 %529  ;;  %v3660_v25 = vmax.f32 %v500_v19, %v532_v21 }
  0xf3   : > { %v3662_v26 = vmax.f32 %v499_v20, %v530_v22 }
  0xf4   : > { %659 = vrot.lane.b32.xlu1 %v3660_v25, %s3301_s11 }
  0xf5   : > { %657 = vrot.lane.b32.xlu0 %v3662_v26, %s3301_s11 }
  0xf8   : > { %815 = vrot.lane.b32.xlu1 %v3632_v43, %s3302_s12 }
  0xf9   : > { %813 = vrot.lane.b32.xlu0 %v3634_v44, %s3302_s12 }
  0xfc   : > { %831 = vrot.lane.b32.xlu1 %v3642_v53, %s3302_s12 }
  0xfd   : > { %829 = vrot.lane.b32.xlu0 %v3644_v54, %s3302_s12 }
 0x100   : > { %819 = vrot.lane.b32.xlu1 %v3652_v17, %s3302_s12 }
 0x101   : > { %817 = vrot.lane.b32.xlu0 %v3654_v18, %s3302_s12 }
 0x104   : > { %835 = vrot.lane.b32.xlu1 %v3660_v25, %s3302_s12 }
 0x105   : > { %833 = vrot.lane.b32.xlu0 %v3662_v26, %s3302_s12 }
 0x108   : > { %991 = vrot.lane.b32.xlu1 %v3632_v43, %s3303_s14 }
 0x109   : > { %989 = vrot.lane.b32.xlu0 %v3634_v44, %s3303_s14 }
 0x10c   : > { %1007 = vrot.lane.b32.xlu1 %v3642_v53, %s3303_s14 }
 0x10d   : > { %1005 = vrot.lane.b32.xlu0 %v3644_v54, %s3303_s14 }
 0x110   : > { %995 = vrot.lane.b32.xlu1 %v3652_v17, %s3303_s14 }
 0x111   : > { %993 = vrot.lane.b32.xlu0 %v3654_v18, %s3303_s14 }
 0x114   : > { %1011 = vrot.lane.b32.xlu1 %v3660_v25, %s3303_s14 }
 0x115   : > { %1009 = vrot.lane.b32.xlu0 %v3662_v26, %s3303_s14 }
 0x12a   : > { %v632_v23 = vpop.permute.xlu1 %631 }
 0x12b   : > { %v630_v24 = vpop.permute.xlu0 %629  ;;  %v3701_v27 = vsub.f32 %v3426_v4, %v632_v23 }
 0x12c   : > { %v3704_v28 = vsub.f32 %v3416_v2, %v630_v24 }
 0x12d   : > { %v695_v29 = vmul.f32 1.442695, %v3701_v27 }
 0x12e   : > { %v693_v30 = vmul.f32 1.442695, %v3704_v28  ;;  %v648_v31 = vpop.permute.xlu1 %647 }
 0x12f   : > { %v646_v32 = vpop.permute.xlu0 %645  ;;  %3007 = vpow2.f32 %v695_v29  ;;  %v3709_v33 = vsub.f32 %v3423_v3, %v648_v31 }
 0x130   : > { %v3712_v34 = vsub.f32 %v3413_v1, %v646_v32  ;;  %3009 = vpow2.f32 %v693_v30 }
 0x131   : > { %v711_v35 = vmul.f32 1.442695, %v3709_v33 }
 0x132   : > { %v709_v36 = vmul.f32 1.442695, %v3712_v34  ;;  %v636_v37 = vpop.permute.xlu1 %635 }
 0x133   : > { %v634_v38 = vpop.permute.xlu0 %633  ;;  %3011 = vpow2.f32 %v711_v35  ;;  %v3717_v39 = vsub.f32 %v3433_v5, %v636_v37 }
 0x134   : > { %v3720_v40 = vsub.f32 %v3436_v6, %v634_v38  ;;  %3013 = vpow2.f32 %v709_v36 }
 0x135   : > { %v699_v45 = vmul.f32 1.442695, %v3717_v39 }
 0x136   : > { %v697_v46 = vmul.f32 1.442695, %v3720_v40  ;;  %v652_v47 = vpop.permute.xlu1 %651 }
 0x137   : > { %v650_v48 = vpop.permute.xlu0 %649  ;;  %3015 = vpow2.f32 %v699_v45  ;;  %v3725_v51 = vsub.f32 %v3443_v7, %v652_v47 }
 0x138   : > { %v3728_v52 = vsub.f32 %v3446_v8, %v650_v48  ;;  %3017 = vpow2.f32 %v697_v46 }
 0x139   : > { %v715_v55 = vmul.f32 1.442695, %v3725_v51 }
 0x13a   : > { %v713_v56 = vmul.f32 1.442695, %v3728_v52  ;;  %v808_v59 = vpop.permute.xlu1 %807 }
 0x13b   : > { %v806_v60 = vpop.permute.xlu0 %805  ;;  %3019 = vpow2.f32 %v715_v55  ;;  %v854_v61 = vsub.f32 %v3426_v4, %v808_v59 }
 0x13c   : > { %v853_v62 = vsub.f32 %v3416_v2, %v806_v60  ;;  %v3008_v19 = vpop.eup %3007  ;;  %3021 = vpow2.f32 %v713_v56 }
 0x13d   : > { %v3010_v20 = vpop.eup %3009  ;;  %v871_v21 = vmul.f32 1.442695, %v854_v61  ;;  %743 = vrot.lane.b32.xlu1 %v3008_v19, %s3298_s19 }
 0x13e   : > { %v869_v22 = vmul.f32 1.442695, %v853_v62  ;;  %741 = vrot.lane.b32.xlu0 %v3010_v20, %s3298_s19  ;;  %v824_v23 = vpop.permute.xlu1 %823 }
 0x13f   : > { %v822_v24 = vpop.permute.xlu0 %821  ;;  %3023 = vpow2.f32 %v871_v21  ;;  %v862_v29 = vsub.f32 %v3423_v3, %v824_v23 }
 0x140   : > { %v861_v30 = vsub.f32 %v3413_v1, %v822_v24  ;;  %v3012_v31 = vpop.eup %3011  ;;  %3025 = vpow2.f32 %v869_v22 }
 0x141   : > { %v3014_v32 = vpop.eup %3013  ;;  %v887_v35 = vmul.f32 1.442695, %v862_v29  ;;  %759 = vrot.lane.b32.xlu1 %v3012_v31, %s3298_s19 }
 0x142   : > { %v885_v36 = vmul.f32 1.442695, %v861_v30  ;;  %757 = vrot.lane.b32.xlu0 %v3014_v32, %s3298_s19  ;;  %v812_v37 = vpop.permute.xlu1 %811 }
 0x143   : > { %v810_v38 = vpop.permute.xlu0 %809  ;;  %3027 = vpow2.f32 %v887_v35  ;;  %v856_v45 = vsub.f32 %v3433_v5, %v812_v37 }
 0x144   : > { %v855_v46 = vsub.f32 %v3436_v6, %v810_v38  ;;  %v3016_v47 = vpop.eup %3015  ;;  %3029 = vpow2.f32 %v885_v36 }
 0x145   : > { %v3018_v48 = vpop.eup %3017  ;;  %v875_v55 = vmul.f32 1.442695, %v856_v45  ;;  %747 = vrot.lane.b32.xlu1 %v3016_v47, %s3298_s19 }
 0x146   : > { %v873_v56 = vmul.f32 1.442695, %v855_v46  ;;  %745 = vrot.lane.b32.xlu0 %v3018_v48, %s3298_s19  ;;  %v828_v59 = vpop.permute.xlu1 %827 }
 0x147   : > { %v826_v60 = vpop.permute.xlu0 %825  ;;  %3031 = vpow2.f32 %v875_v55  ;;  %v864_v61 = vsub.f32 %v3443_v7, %v828_v59  ;;  %v3304_v55 = vmov 0  }
 0x148   : > { %v863_v62 = vsub.f32 %v3446_v8, %v826_v60  ;;  %v3020_v19 = vpop.eup %3019  ;;  %3033 = vpow2.f32 %v873_v56  ;;  %2922 = vset.pattern.permute.xlu0 %v3304_v55  ;;  %2928 = vset.pattern.permute.xlu1 %v3304_v55 }
 0x149   : > { %v3022_v20 = vpop.eup %3021  ;;  %v891_v21 = vmul.f32 1.442695, %v864_v61  ;;  %763 = vrot.lane.b32.xlu1 %v3020_v19, %s3298_s19 }
 0x14a   : > { %v889_v22 = vmul.f32 1.442695, %v863_v62  ;;  %761 = vrot.lane.b32.xlu0 %v3022_v20, %s3298_s19  ;;  %v984_v23 = vpop.permute.xlu1 %983 }
 0x14b   : > { %v982_v24 = vpop.permute.xlu0 %981  ;;  %3035 = vpow2.f32 %v891_v21  ;;  %v1030_v29 = vsub.f32 %v3426_v4, %v984_v23 }
 0x14c   : > { %v1029_v30 = vsub.f32 %v3416_v2, %v982_v24  ;;  %v3024_v31 = vpop.eup %3023  ;;  %3037 = vpow2.f32 %v889_v22 }
 0x14d   : > { %v3026_v32 = vpop.eup %3025  ;;  %v1047_v35 = vmul.f32 1.442695, %v1030_v29  ;;  %919 = vrot.lane.b32.xlu1 %v3024_v31, %s3299_s26 }
 0x14e   : > { %v1045_v36 = vmul.f32 1.442695, %v1029_v30  ;;  %917 = vrot.lane.b32.xlu0 %v3026_v32, %s3299_s26  ;;  %v1000_v37 = vpop.permute.xlu1 %999 }
 0x14f   : > { %v998_v38 = vpop.permute.xlu0 %997  ;;  %3039 = vpow2.f32 %v1047_v35  ;;  %v1038_v45 = vsub.f32 %v3423_v3, %v1000_v37 }
 0x150   : > { %v1037_v46 = vsub.f32 %v3413_v1, %v998_v38  ;;  %v3028_v47 = vpop.eup %3027  ;;  %3041 = vpow2.f32 %v1045_v36 }
 0x151   : > { %v3030_v4 = vpop.eup %3029  ;;  %v1063_v2 = vmul.f32 1.442695, %v1038_v45  ;;  %935 = vrot.lane.b32.xlu1 %v3028_v47, %s3299_s26 }
 0x152   : > { %v1061_v48 = vmul.f32 1.442695, %v1037_v46  ;;  %933 = vrot.lane.b32.xlu0 %v3030_v4, %s3299_s26  ;;  %v988_v56 = vpop.permute.xlu1 %987 }
 0x153   : > { %v986_v59 = vpop.permute.xlu0 %985  ;;  %3043 = vpow2.f32 %v1063_v2  ;;  %v1032_v3 = vsub.f32 %v3433_v5, %v988_v56 }
 0x154   : > { %v1031_v1 = vsub.f32 %v3436_v6, %v986_v59  ;;  %v3032_v60 = vpop.eup %3031  ;;  %3045 = vpow2.f32 %v1061_v48 }
 0x155   : > { %v3034_v61 = vpop.eup %3033  ;;  %v1051_v62 = vmul.f32 1.442695, %v1032_v3  ;;  %923 = vrot.lane.b32.xlu1 %v3032_v60, %s3299_s26 }
 0x156   : > { %v1049_v19 = vmul.f32 1.442695, %v1031_v1  ;;  %921 = vrot.lane.b32.xlu0 %v3034_v61, %s3299_s26  ;;  %v1004_v20 = vpop.permute.xlu1 %1003 }
 0x157   : > { %v1002_v21 = vpop.permute.xlu0 %1001  ;;  %3047 = vpow2.f32 %v1051_v62  ;;  %v1040_v22 = vsub.f32 %v3443_v7, %v1004_v20 }
 0x158   : > { %v1039_v23 = vsub.f32 %v3446_v8, %v1002_v21  ;;  %v3036_v24 = vpop.eup %3035  ;;  %3049 = vpow2.f32 %v1049_v19 }
 0x159   : > { %v3038_v5 = vpop.eup %3037  ;;  %v1067_v6 = vmul.f32 1.442695, %v1040_v22  ;;  %939 = vrot.lane.b32.xlu1 %v3036_v24, %s3299_s26 }
 0x15a   : > { %v1065_v29 = vmul.f32 1.442695, %v1039_v23  ;;  %937 = vrot.lane.b32.xlu0 %v3038_v5, %s3299_s26  ;;  %v640_v30 = vpop.permute.xlu1 %639 }
 0x15b   : > { %v638_v31 = vpop.permute.xlu0 %637  ;;  %3051 = vpow2.f32 %v1067_v6  ;;  %v3767_v32 = vsub.f32 %v3485_v9, %v640_v30 }
 0x15c   : > { %v3770_v35 = vsub.f32 %v3488_v10, %v638_v31  ;;  %v3040_v7 = vpop.eup %3039  ;;  %3053 = vpow2.f32 %v1065_v29 }
 0x15d   : > { %v3042_v8 = vpop.eup %3041  ;;  %v703_v36 = vmul.f32 1.442695, %v3767_v32  ;;  %1095 = vrot.lane.b32.xlu1 %v3040_v7, %s3300_s9 }
 0x15e   : > { %v701_v37 = vmul.f32 1.442695, %v3770_v35  ;;  %1093 = vrot.lane.b32.xlu0 %v3042_v8, %s3300_s9  ;;  %v656_v38 = vpop.permute.xlu1 %655 }
 0x15f   : > { %v654_v45 = vpop.permute.xlu0 %653  ;;  %3055 = vpow2.f32 %v703_v36  ;;  %v3777_v46 = vsub.f32 %v3495_v11, %v656_v38 }
 0x160   : > { %v3780_v47 = vsub.f32 %v3498_v12, %v654_v45  ;;  %v3044_v4 = vpop.eup %3043  ;;  %3057 = vpow2.f32 %v701_v37 }
 0x161   : > { %v3046_v2 = vpop.eup %3045  ;;  %v719_v48 = vmul.f32 1.442695, %v3777_v46  ;;  %1111 = vrot.lane.b32.xlu1 %v3044_v4, %s3300_s9 }
 0x162   : > { %v717_v56 = vmul.f32 1.442695, %v3780_v47  ;;  %1109 = vrot.lane.b32.xlu0 %v3046_v2, %s3300_s9  ;;  %v644_v59 = vpop.permute.xlu1 %643 }
 0x163   : > { %v642_v3 = vpop.permute.xlu0 %641  ;;  %3059 = vpow2.f32 %v719_v48  ;;  %v3787_v1 = vsub.f32 %v3505_v13, %v644_v59 }
 0x164   : > { %v3790_v60 = vsub.f32 %v3508_v14, %v642_v3  ;;  %v3048_v61 = vpop.eup %3047  ;;  %3061 = vpow2.f32 %v717_v56 }
 0x165   : > { %v3050_v62 = vpop.eup %3049  ;;  %v707_v19 = vmul.f32 1.442695, %v3787_v1  ;;  %1099 = vrot.lane.b32.xlu1 %v3048_v61, %s3300_s9 }
 0x166   : > { %v705_v20 = vmul.f32 1.442695, %v3790_v60  ;;  %1097 = vrot.lane.b32.xlu0 %v3050_v62, %s3300_s9  ;;  %v660_v21 = vpop.permute.xlu1 %659 }
 0x167   : > { %v658_v22 = vpop.permute.xlu0 %657  ;;  %3063 = vpow2.f32 %v707_v19  ;;  %v3797_v23 = vsub.f32 %v3515_v15, %v660_v21 }
 0x168   : > { %v3800_v24 = vsub.f32 %v3518_v16, %v658_v22  ;;  %v3052_v5 = vpop.eup %3051  ;;  %3065 = vpow2.f32 %v705_v20 }
 0x169   : > { %v3054_v6 = vpop.eup %3053  ;;  %v723_v29 = vmul.f32 1.442695, %v3797_v23  ;;  %1115 = vrot.lane.b32.xlu1 %v3052_v5, %s3300_s9 }
 0x16a   : > { %v721_v30 = vmul.f32 1.442695, %v3800_v24  ;;  %1113 = vrot.lane.b32.xlu0 %v3054_v6, %s3300_s9  ;;  %v816_v31 = vpop.permute.xlu1 %815 }
 0x16b   : > { %v814_v7 = vpop.permute.xlu0 %813  ;;  %3067 = vpow2.f32 %v723_v29  ;;  %v858_v8 = vsub.f32 %v3485_v9, %v816_v31 }
 0x16c   : > { %v857_v36 = vsub.f32 %v3488_v10, %v814_v7  ;;  %v3056_v37 = vpop.eup %3055  ;;  %3069 = vpow2.f32 %v721_v30 }
 0x16d   : > { %v3058_v38 = vpop.eup %3057  ;;  %v879_v45 = vmul.f32 1.442695, %v858_v8  ;;  %751 = vrot.lane.b32.xlu1 %v3056_v37, %s3298_s19 }
 0x16e   : > { %v877_v4 = vmul.f32 1.442695, %v857_v36  ;;  %749 = vrot.lane.b32.xlu0 %v3058_v38, %s3298_s19  ;;  %v832_v2 = vpop.permute.xlu1 %831 }
 0x16f   : > { %v830_v48 = vpop.permute.xlu0 %829  ;;  %3071 = vpow2.f32 %v879_v45  ;;  %v866_v56 = vsub.f32 %v3495_v11, %v832_v2 }
 0x170   : > { %v865_v59 = vsub.f32 %v3498_v12, %v830_v48  ;;  %v3060_v3 = vpop.eup %3059  ;;  %3073 = vpow2.f32 %v877_v4 }
 0x171   : > { %v3062_v61 = vpop.eup %3061  ;;  %v895_v62 = vmul.f32 1.442695, %v866_v56  ;;  %767 = vrot.lane.b32.xlu1 %v3060_v3, %s3298_s19 }
 0x172   : > { %v893_v19 = vmul.f32 1.442695, %v865_v59  ;;  %765 = vrot.lane.b32.xlu0 %v3062_v61, %s3298_s19  ;;  %v820_v20 = vpop.permute.xlu1 %819 }
 0x173   : > { %v818_v21 = vpop.permute.xlu0 %817  ;;  %3075 = vpow2.f32 %v895_v62  ;;  %v860_v22 = vsub.f32 %v3505_v13, %v820_v20 }
 0x174   : > { %v859_v5 = vsub.f32 %v3508_v14, %v818_v21  ;;  %v3064_v6 = vpop.eup %3063  ;;  %3077 = vpow2.f32 %v893_v19 }
 0x175   : > { %v3066_v29 = vpop.eup %3065  ;;  %v883_v30 = vmul.f32 1.442695, %v860_v22  ;;  %755 = vrot.lane.b32.xlu1 %v3064_v6, %s3298_s19 }
 0x176   : > { %v881_v31 = vmul.f32 1.442695, %v859_v5  ;;  %753 = vrot.lane.b32.xlu0 %v3066_v29, %s3298_s19  ;;  %v836_v7 = vpop.permute.xlu1 %835 }
 0x177   : > { %v834_v8 = vpop.permute.xlu0 %833  ;;  %3079 = vpow2.f32 %v883_v30  ;;  %v868_v36 = vsub.f32 %v3515_v15, %v836_v7 }
 0x178   : > { %v867_v37 = vsub.f32 %v3518_v16, %v834_v8  ;;  %v3068_v38 = vpop.eup %3067  ;;  %3081 = vpow2.f32 %v881_v31 }
 0x179   : > { %v3070_v45 = vpop.eup %3069  ;;  %v899_v4 = vmul.f32 1.442695, %v868_v36  ;;  %771 = vrot.lane.b32.xlu1 %v3068_v38, %s3298_s19 }
 0x17a   : > { %v897_v2 = vmul.f32 1.442695, %v867_v37  ;;  %769 = vrot.lane.b32.xlu0 %v3070_v45, %s3298_s19  ;;  %v992_v48 = vpop.permute.xlu1 %991 }
 0x17b   : > { %v990_v56 = vpop.permute.xlu0 %989  ;;  %3083 = vpow2.f32 %v899_v4  ;;  %v1034_v59 = vsub.f32 %v3485_v9, %v992_v48 }
 0x17c   : > { %v1033_v3 = vsub.f32 %v3488_v10, %v990_v56  ;;  %v3072_v61 = vpop.eup %3071  ;;  %3085 = vpow2.f32 %v897_v2 }
 0x17d   : > { %v3074_v62 = vpop.eup %3073  ;;  %v1055_v19 = vmul.f32 1.442695, %v1034_v59  ;;  %927 = vrot.lane.b32.xlu1 %v3072_v61, %s3299_s26 }
 0x17e   : > { %v1053_v20 = vmul.f32 1.442695, %v1033_v3  ;;  %925 = vrot.lane.b32.xlu0 %v3074_v62, %s3299_s26  ;;  %v1008_v21 = vpop.permute.xlu1 %1007  ;;  %v1488_v62 = vld [vmem:[%s3398_s17 + $0x78] sm:$0xff] }
 0x17f   : > { %v1006_v22 = vpop.permute.xlu0 %1005  ;;  %3087 = vpow2.f32 %v1055_v19  ;;  %v1042_v5 = vsub.f32 %v3495_v11, %v1008_v21  ;;  %v1485_v19 = vld [vmem:[%s3398_s17 + $0x60] sm:$0xff]  ;;  %vm1504_vm1 = vcmp.eq.s32.totalorder %v1488_v62, 1 }
 0x180   : > { %v1041_v6 = vsub.f32 %v3498_v12, %v1006_v22  ;;  %v3076_v29 = vpop.eup %3075  ;;  %3089 = vpow2.f32 %v1053_v20  ;;  %v1486_v20 = vld [vmem:[%s3398_s17 + $0x68] sm:$0xff]  ;;  %vm1501_vm2 = vcmp.eq.s32.totalorder %v1485_v19, 1  ;;  %v3305_v22 = vmov 0.0   ;;  %v3178_v62 = vld [vmem:[%s3387_s10] sm:$0xff] }
 0x181   : > { %v3078_v9 = vpop.eup %3077  ;;  %v1071_v10 = vmul.f32 1.442695, %v1042_v5  ;;  %943 = vrot.lane.b32.xlu1 %v3076_v29, %s3299_s26  ;;  %vm1502_vm3 = vcmp.eq.s32.totalorder %v1486_v20, 1 }
 0x182   : > { %v1069_v30 = vmul.f32 1.442695, %v1041_v6  ;;  %941 = vrot.lane.b32.xlu0 %v3078_v9, %s3299_s26  ;;  %v996_v31 = vpop.permute.xlu1 %995  ;;  %v2748_v6 = vsel %vm1504_vm1, 1.0, %v3305_v22 }
 0x183   : > { %v994_v7 = vpop.permute.xlu0 %993  ;;  %3091 = vpow2.f32 %v1071_v10  ;;  %v1036_v8 = vsub.f32 %v3505_v13, %v996_v31  ;;  %v1471_v10 = vld [vmem:[%s3403_s28 + $0x70] sm:$0xff]  ;;  %v3853_v31 = vld [vmem:[%s3403_s28 + $0x60] sm:$0xff] }
 0x184   : > { %v1035_v36 = vsub.f32 %v3508_v14, %v994_v7  ;;  %v3080_v37 = vpop.eup %3079  ;;  %3093 = vpow2.f32 %v1069_v30  ;;  %v1472_v30 = vld [vmem:[%s3403_s28 + $0x78] sm:$0xff]  ;;  %v3856_v7 = vld [vmem:[%s3403_s28 + $0x68] sm:$0xff] }
 0x185   : > { %v3082_v11 = vpop.eup %3081  ;;  %v1059_v12 = vmul.f32 1.442695, %v1036_v8  ;;  %931 = vrot.lane.b32.xlu1 %v3080_v37, %s3299_s26  ;;  %v2745_v8 = vsel %vm1501_vm2, 1.0, %v3305_v22 }
 0x186   : > { %v1057_v38 = vmul.f32 1.442695, %v1035_v36  ;;  %929 = vrot.lane.b32.xlu0 %v3082_v11, %s3299_s26  ;;  %v1012_v45 = vpop.permute.xlu1 %1011  ;;  %v2746_v36 = vsel %vm1502_vm3, 1.0, %v3305_v22  ;;  %v1552_v11 = vmul.f32 %v2748_v6, %v1472_v30 }
 0x187   : > { %v1010_v4 = vpop.permute.xlu0 %1009  ;;  %3095 = vpow2.f32 %v1059_v12  ;;  %v1044_v2 = vsub.f32 %v3515_v15, %v1012_v45  ;;  %v1487_v15 = vld [vmem:[%s3398_s17 + $0x70] sm:$0xff]  ;;  %v2929_v45 = vpack.i.bf16 %v1472_v30, %v1471_v10 }
 0x188   : > { %v1043_v13 = vsub.f32 %v3518_v16, %v1010_v4  ;;  %v3084_v48 = vpop.eup %3083  ;;  %3097 = vpow2.f32 %v1057_v38  ;;  %vm1503_vm0 = vcmp.eq.s32.totalorder %v1487_v15, 1  ;;  %v1549_v4 = vmul.f32 %v2745_v8, %v3853_v31 }
 0x189   : > { %v3086_v14 = vpop.eup %3085  ;;  %v1075_v56 = vmul.f32 1.442695, %v1044_v2  ;;  %947 = vrot.lane.b32.xlu1 %v3084_v48, %s3299_s26  ;;  %v2747_v5 = vsel %vm1503_vm0, 1.0, %v3305_v22  ;;  %v1550_v2 = vmul.f32 %v2746_v36, %v3856_v7 }
 0x18a   : > { %v1073_v59 = vmul.f32 1.442695, %v1043_v13  ;;  %945 = vrot.lane.b32.xlu0 %v3086_v14, %s3299_s26  ;;  %v1551_v37 = vmul.f32 %v2747_v5, %v1471_v10  ;;  %v3179_v5 = vld [vmem:[%s3387_s10 + $0x48] sm:$0xff] }
 0x18b   : > { %3099 = vpow2.f32 %v1075_v56  ;;  %v2934_v48 = vpack.i.bf16 %v1550_v2, %v1549_v4  ;;  %v574_v6 = vsub.f32 %v3179_v5, %v3570_v49 }
 0x18c   : > { %v3088_v3 = vpop.eup %3087  ;;  %3101 = vpow2.f32 %v1073_v59  ;;  %v2923_v13 = vpack.i.bf16 %v1552_v11, %v1551_v37  ;;  %v3182_v11 = vld [vmem:[%s3387_s10 + $0x10] sm:$0xff] }
 0x18d   : > { %v3090_v61 = vpop.eup %3089  ;;  %1103 = vrot.lane.b32.xlu1 %v3088_v3, %s3300_s9  ;;  %v567_v49 = vsub.f32 %v3182_v11, %v3582_v58 }
 0x18e   : > { %1101 = vrot.lane.b32.xlu0 %v3090_v61, %s3300_s9  ;;  %v3177_v61 = vld [vmem:[%s3387_s10 + $0x8] sm:$0xff] }
 0x18f   : > { %v566_v15 = vsub.f32 %v3177_v61, %v3560_v41  ;;  %v599_v41 = vmul.f32 1.442695, %v574_v6  ;;  %v585_v2 = vmul.f32 1.442695, %v567_v49 }
 0x190   : > { %v3092_v16 = vpop.eup %3091 }
 0x191   : > { %v3094_v21 = vpop.eup %3093  ;;  %1119 = vrot.lane.b32.xlu1 %v3092_v16, %s3300_s9  ;;  %v565_v16 = vsub.f32 %v3178_v62, %v3562_v42  ;;  %v3181_v42 = vld [vmem:[%s3387_s10 + $0x18] sm:$0xff] }
 0x192   : > { %1117 = vrot.lane.b32.xlu0 %v3094_v21, %s3300_s9  ;;  %v583_v21 = vmul.f32 1.442695, %v566_v15  ;;  %v568_v36 = vsub.f32 %v3181_v42, %v3580_v57 }
 0x194   : > { %v3096_v29 = vpop.eup %3095  ;;  %3103 = vpow2.f32 %v583_v21 }
 0x195   : > { %v3098_v9 = vpop.eup %3097  ;;  %1107 = vrot.lane.b32.xlu1 %v3096_v29, %s3300_s9  ;;  %v581_v29 = vmul.f32 1.442695, %v565_v16 }
 0x196   : > { %1105 = vrot.lane.b32.xlu0 %v3098_v9, %s3300_s9  ;;  %v3180_v9 = vld [vmem:[%s3387_s10 + $0x40] sm:$0xff] }
 0x197   : > { %v573_v10 = vsub.f32 %v3180_v9, %v3572_v50  ;;  %3105 = vpow2.f32 %v581_v29  ;;  %v3183_v50 = vld [vmem:[%s3387_s10 + $0x58] sm:$0xff] }
 0x198   : > { %v3100_v12 = vpop.eup %3099  ;;  %3107 = vpow2.f32 %v599_v41  ;;  %v576_v4 = vsub.f32 %v3183_v50, %v3588_v63 }
 0x199   : > { %v3102_v38 = vpop.eup %3101  ;;  %1123 = vrot.lane.b32.xlu1 %v3100_v12, %s3300_s9  ;;  %v597_v37 = vmul.f32 1.442695, %v573_v10 }
 0x19a   : > { %1121 = vrot.lane.b32.xlu0 %v3102_v38, %s3300_s9  ;;  %v603_v57 = vmul.f32 1.442695, %v576_v4 }
 0x19b   : > { %3109 = vpow2.f32 %v597_v37 }
 0x19d   : > { %2930 = vperm.xlu1 %2928, %v2929_v45   ;;  %v587_v45 = vmul.f32 1.442695, %v568_v36 }
 0x19e   : > { %2924 = vperm.xlu0 %2922, %v2923_v13   ;;  %v3184_v13 = vld [vmem:[%s3387_s10 + $0x50] sm:$0xff] }
 0x19f   : > { %3111 = vpow2.f32 %v587_v45 }
 0x1a0   : > { %3113 = vpow2.f32 %v585_v2 }
 0x1a1   : > { %2935 = vperm.xlu1 %2928, %v2934_v48   ;;  %v575_v48 = vsub.f32 %v3184_v13, %v3590_v0  ;;  %3115 = vpow2.f32 %v603_v57  ;;  %v3104_v21 = vpop.eup %3103 }
 0x1a3   : > { %v601_v62 = vmul.f32 1.442695, %v575_v48 }
 0x1a4   : > { %v3106_v6 = vpop.eup %3105 }
 0x1a5   : > { %3117 = vpow2.f32 %v601_v62  ;;  %v3108_v41 = vpop.eup %3107 }
 0x1a8   : > { %v3110_v36 = vpop.eup %3109 }
 0x1ac   : > { %v3112_v2 = vpop.eup %3111 }
 0x1ad   : > { %v3114_v57 = vpop.eup %3113 }
 0x1af   : > { %v744_v14 = vpop.permute.xlu1 %743 }
 0x1b0   : > { %v742_v56 = vpop.permute.xlu0 %741  ;;  %v790_v29 = vadd.f32 %v3104_v21, %v744_v14 }
 0x1b1   : > { %v789_v9 = vadd.f32 %v3106_v6, %v742_v56 }
 0x1b3   : > { %v760_v59 = vpop.permute.xlu1 %759 }
 0x1b4   : > { %v758_v3 = vpop.permute.xlu0 %757  ;;  %v798_v37 = vadd.f32 %v3108_v41, %v760_v59  ;;  %v3116_v59 = vpop.eup %3115 }
 0x1b5   : > { %v797_v45 = vadd.f32 %v3110_v36, %v758_v3 }
 0x1b7   : > { %v748_v19 = vpop.permute.xlu1 %747 }
 0x1b8   : > { %v3868_v20 = vpop.permute.xlu0 %745  ;;  %v792_v14 = vadd.f32 %v3112_v2, %v748_v19 }
 0x1bb   : > { %v3874_v30 = vpop.permute.xlu1 %763 }
 0x1bc   : > { %v3876_v8 = vpop.permute.xlu0 %761 }
 0x1bf   : > { %v920_v12 = vpop.permute.xlu1 %919 }
 0x1c0   : > { %v918_v38 = vpop.permute.xlu0 %917  ;;  %v966_v10 = vadd.f32 %v920_v12, %v790_v29  ;;  %v791_v12 = vadd.f32 %v3114_v57, %v3868_v20  ;;  %v3118_v29 = vpop.eup %3117 }
 0x1c1   : > { %v965_v42 = vadd.f32 %v918_v38, %v789_v9 }
 0x1c3   : > { %v936_v61 = vpop.permute.xlu1 %935 }
 0x1c4   : > { %v934_v15 = vpop.permute.xlu0 %933  ;;  %v974_v4 = vadd.f32 %v936_v61, %v798_v37  ;;  %v800_v61 = vadd.f32 %v3116_v59, %v3874_v30 }
 0x1c5   : > { %v973_v13 = vadd.f32 %v934_v15, %v797_v45 }
 0x1c7   : > { %v924_v16 = vpop.permute.xlu1 %923 }
 0x1c8   : > { %v922_v58 = vpop.permute.xlu0 %921  ;;  %v968_v21 = vadd.f32 %v924_v16, %v792_v14  ;;  %v3186_v14 = vld [vmem:[%s3387_s10 + $0x20] sm:$0xff] }
 0x1c9   : > { %v967_v6 = vadd.f32 %v922_v58, %v791_v12 }
 0x1cb   : > { %v940_v5 = vpop.permute.xlu1 %939 }
 0x1cc   : > { %v938_v63 = vpop.permute.xlu0 %937  ;;  %v976_v19 = vadd.f32 %v940_v5, %v800_v61 }
 0x1cf   : > { %v1096_v0 = vpop.permute.xlu1 %1095 }
 0x1d0   : > { %v1142_v11 = vadd.f32 %v1096_v0, %v966_v10  ;;  %v1094_v49 = vpop.permute.xlu0 %1093  ;;  %v799_v10 = vadd.f32 %v3118_v29, %v3876_v8 }
 0x1d1   : > { %v1141_v50 = vadd.f32 %v1094_v49, %v965_v42 }
 0x1d2   : > { %3119 = vlog2.f32 %v1142_v11  ;;  %v975_v42 = vadd.f32 %v938_v63, %v799_v10 }
 0x1d3   : > { %3121 = vlog2.f32 %v1141_v50  ;;  %v1112_v48 = vpop.permute.xlu1 %1111 }
 0x1d4   : > { %v1150_v62 = vadd.f32 %v1112_v48, %v974_v4  ;;  %v1110_v56 = vpop.permute.xlu0 %1109 }
 0x1d5   : > { %v1149_v38 = vadd.f32 %v1110_v56, %v973_v13  ;;  %v3185_v13 = vld [vmem:[%s3387_s10 + $0x28] sm:$0xff] }
 0x1d6   : > { %3123 = vlog2.f32 %v1150_v62  ;;  %v570_v48 = vsub.f32 %v3185_v13, %v3632_v43  ;;  %v569_v62 = vsub.f32 %v3186_v14, %v3634_v44  ;;  %v3188_v44 = vld [vmem:[%s3387_s10 + $0x60] sm:$0xff] }
 0x1d7   : > { %3125 = vlog2.f32 %v1149_v38  ;;  %v1100_v3 = vpop.permute.xlu1 %1099 }
 0x1d8   : > { %v1144_v9 = vadd.f32 %v1100_v3, %v968_v21  ;;  %v1098_v15 = vpop.permute.xlu0 %1097  ;;  %v3187_v3 = vld [vmem:[%s3387_s10 + $0x68] sm:$0xff]  ;;  %v589_v61 = vmul.f32 1.442695, %v569_v62 }
 0x1d9   : > { %v1143_v41 = vadd.f32 %v1098_v15, %v967_v6  ;;  %v591_v6 = vmul.f32 1.442695, %v570_v48  ;;  %v578_v43 = vsub.f32 %v3187_v3, %v3642_v53 }
 0x1da   : > { %3127 = vlog2.f32 %v1144_v9  ;;  %v577_v9 = vsub.f32 %v3188_v44, %v3644_v54 }
 0x1db   : > { %3129 = vlog2.f32 %v1143_v41  ;;  %v1116_v20 = vpop.permute.xlu1 %1115  ;;  %v607_v53 = vmul.f32 1.442695, %v578_v43 }
 0x1dc   : > { %v1152_v0 = vadd.f32 %v1116_v20, %v976_v19  ;;  %v1114_v16 = vpop.permute.xlu0 %1113  ;;  %v3189_v20 = vld [vmem:[%s3387_s10 + $0x38] sm:$0xff]  ;;  %v605_v54 = vmul.f32 1.442695, %v577_v9 }
 0x1dd   : > { %v1151_v36 = vadd.f32 %v1114_v16, %v975_v42  ;;  %v3190_v16 = vld [vmem:[%s3387_s10 + $0x30] sm:$0xff] }
 0x1de   : > { %3131 = vlog2.f32 %v1152_v0  ;;  %v572_v0 = vsub.f32 %v3189_v20, %v3652_v17 }
 0x1df   : > { %v3120_v58 = vpop.eup %3119  ;;  %3133 = vlog2.f32 %v1151_v36  ;;  %v3889_v37 = vpop.permute.xlu1 %751  ;;  %v571_v36 = vsub.f32 %v3190_v16, %v3654_v18 }
 0x1e0   : > { %v3122_v30 = vpop.eup %3121  ;;  %v1160_v11 = vmul.f32 0.6931472, %v3120_v58  ;;  %v3891_v49 = vpop.permute.xlu0 %749  ;;  %3135 = vpow2.f32 %v591_v6 }
 0x1e1   : > { %v1158_v8 = vmul.f32 0.6931472, %v3122_v30  ;;  %3137 = vpow2.f32 %v589_v61 }
 0x1e2   : > { %1207 = vrot.lane.b32.xlu1 %v1160_v11, %s3301_s11  ;;  %3139 = vpow2.f32 %v607_v53  ;;  %v595_v11 = vmul.f32 1.442695, %v572_v0 }
 0x1e3   : > { %v3124_v5 = vpop.eup %3123  ;;  %1205 = vrot.lane.b32.xlu0 %v1158_v8, %s3301_s11  ;;  %v3895_v63 = vpop.permute.xlu1 %767  ;;  %v3191_v8 = vld [vmem:[%s3387_s10 + $0x78] sm:$0xff]  ;;  %3141 = vpow2.f32 %v605_v54 }
 0x1e4   : > { %v3126_v45 = vpop.eup %3125  ;;  %v1176_v50 = vmul.f32 0.6931472, %v3124_v5  ;;  %v3897_v4 = vpop.permute.xlu0 %765  ;;  %v580_v5 = vsub.f32 %v3191_v8, %v3660_v25  ;;  %3143 = vpow2.f32 %v595_v11 }
 0x1e5   : > { %v1174_v2 = vmul.f32 0.6931472, %v3126_v45  ;;  %v593_v45 = vmul.f32 1.442695, %v571_v36 }
 0x1e6   : > { %1223 = vrot.lane.b32.xlu1 %v1176_v50, %s3301_s11  ;;  %v3192_v50 = vld [vmem:[%s3387_s10 + $0x70] sm:$0xff]  ;;  %v611_v48 = vmul.f32 1.442695, %v580_v5 }
 0x1e7   : > { %v3128_v57 = vpop.eup %3127  ;;  %1221 = vrot.lane.b32.xlu0 %v1174_v2, %s3301_s11  ;;  %v3905_v56 = vpop.permute.xlu1 %755  ;;  %v579_v17 = vsub.f32 %v3192_v50, %v3662_v26  ;;  %3145 = vpow2.f32 %v593_v45 }
 0x1e8   : > { %v3130_v12 = vpop.eup %3129  ;;  %v1164_v38 = vmul.f32 0.6931472, %v3128_v57  ;;  %v3907_v21 = vpop.permute.xlu0 %753  ;;  %3147 = vpow2.f32 %v611_v48 }
 0x1e9   : > { %v1162_v59 = vmul.f32 0.6931472, %v3130_v12  ;;  %v609_v18 = vmul.f32 1.442695, %v579_v17 }
 0x1ea   : > { %1211 = vrot.lane.b32.xlu1 %v1164_v38, %s3301_s11 }
 0x1eb   : > { %v3132_v29 = vpop.eup %3131  ;;  %1209 = vrot.lane.b32.xlu0 %v1162_v59, %s3301_s11  ;;  %v3915_v15 = vpop.permute.xlu1 %771  ;;  %3149 = vpow2.f32 %v609_v18 }
 0x1ec   : > { %v3134_v10 = vpop.eup %3133  ;;  %v1180_v41 = vmul.f32 0.6931472, %v3132_v29  ;;  %v3917_v19 = vpop.permute.xlu0 %769 }
 0x1ed   : > { %v1178_v42 = vmul.f32 0.6931472, %v3134_v10  ;;  %v3136_v62 = vpop.eup %3135 }
 0x1ee   : > { %1227 = vrot.lane.b32.xlu1 %v1180_v41, %s3301_s11  ;;  %v3138_v38 = vpop.eup %3137  ;;  %v794_v25 = vadd.f32 %v3136_v62, %v3889_v37 }
 0x1ef   : > { %1225 = vrot.lane.b32.xlu0 %v1178_v42, %s3301_s11  ;;  %v928_v58 = vpop.permute.xlu1 %927  ;;  %v793_v6 = vadd.f32 %v3138_v38, %v3891_v49  ;;  %v3140_v26 = vpop.eup %3139 }
 0x1f0   : > { %v926_v30 = vpop.permute.xlu0 %925  ;;  %v970_v3 = vadd.f32 %v928_v58, %v794_v25  ;;  %v3142_v61 = vpop.eup %3141  ;;  %v802_v44 = vadd.f32 %v3140_v26, %v3895_v63 }
 0x1f1   : > { %v969_v43 = vadd.f32 %v926_v30, %v793_v6  ;;  %v801_v41 = vadd.f32 %v3142_v61, %v3897_v4  ;;  %v3144_v20 = vpop.eup %3143 }
 0x1f2   : > { %v796_v49 = vadd.f32 %v3144_v20, %v3905_v56 }
 0x1f3   : > { %v944_v2 = vpop.permute.xlu1 %943 }
 0x1f4   : > { %v942_v13 = vpop.permute.xlu0 %941  ;;  %v978_v53 = vadd.f32 %v944_v2, %v802_v44  ;;  %v3146_v54 = vpop.eup %3145  ;;  %v1481_v44 = vld [vmem:[%s3398_s17 + $0x40] sm:$0xff] }
 0x1f5   : > { %v977_v0 = vadd.f32 %v942_v13, %v801_v41  ;;  %v795_v58 = vadd.f32 %v3146_v54, %v3907_v21  ;;  %v3148_v11 = vpop.eup %3147  ;;  %v3952_v41 = vld [vmem:[%s3403_s28 + $0x58] sm:$0xff]  ;;  %vm1497_vm6 = vcmp.eq.s32.totalorder %v1481_v44, 1  ;;  %v1479_v54 = vld [vmem:[%s3398_s17 + $0x30] sm:$0xff] }
 0x1f6   : > { %v804_v45 = vadd.f32 %v3148_v11, %v3915_v15  ;;  %v1483_v15 = vld [vmem:[%s3398_s17 + $0x50] sm:$0xff]  ;;  %vm1495_vm10 = vcmp.eq.s32.totalorder %v1479_v54, 1 }
 0x1f7   : > { %v932_v57 = vpop.permute.xlu1 %931  ;;  %vm1499_vm4 = vcmp.eq.s32.totalorder %v1483_v15, 1  ;;  %v1475_v44 = vld [vmem:[%s3398_s17 + $0x10] sm:$0xff] }
 0x1f8   : > { %v930_v14 = vpop.permute.xlu0 %929  ;;  %v972_v63 = vadd.f32 %v932_v57, %v796_v49  ;;  %v3150_v5 = vpop.eup %3149  ;;  %v2743_v61 = vsel %vm1499_vm4, 1.0, %v3305_v22  ;;  %vm1491_vm14 = vcmp.eq.s32.totalorder %v1475_v44, 1 }
 0x1f9   : > { %v971_v8 = vadd.f32 %v930_v14, %v795_v58  ;;  %v803_v2 = vadd.f32 %v3150_v5, %v3917_v19  ;;  %v1484_v19 = vld [vmem:[%s3398_s17 + $0x58] sm:$0xff] }
 0x1fa   : > { %vm1500_vm5 = vcmp.eq.s32.totalorder %v1484_v19, 1  ;;  %v1480_v58 = vld [vmem:[%s3398_s17 + $0x38] sm:$0xff] }
 0x1fb   : > { %v948_v12 = vpop.permute.xlu1 %947  ;;  %vm1496_vm11 = vcmp.eq.s32.totalorder %v1480_v58, 1 }
 0x1fc   : > { %v946_v59 = vpop.permute.xlu0 %945  ;;  %v980_v13 = vadd.f32 %v948_v12, %v804_v45  ;;  %v1317_v12 = vlaneseq  ;;  %v3965_v45 = vld [vmem:[%s3403_s28 + $0x40] sm:$0xff] }
 0x1fd   : > { %v979_v21 = vadd.f32 %v946_v59, %v803_v2 }
 0x1ff   : > { %v1104_v29 = vpop.permute.xlu1 %1103 }
 0x200   : > { %v1146_v9 = vadd.f32 %v1104_v29, %v970_v3  ;;  %v1102_v10 = vpop.permute.xlu0 %1101 }
 0x201   : > { %v1145_v42 = vadd.f32 %v1102_v10, %v969_v43  ;;  %v3942_v43 = vld [vmem:[%s3403_s28 + $0x50] sm:$0xff]  ;;  %v3948_v10 = vand.u32 127, %v1317_v12 }
 0x202   : > { %3151 = vlog2.f32 %v1146_v9  ;;  %v1482_v9 = vld [vmem:[%s3398_s17 + $0x48] sm:$0xff] }
 0x203   : > { %3153 = vlog2.f32 %v1145_v42  ;;  %v1120_v37 = vpop.permute.xlu1 %1119  ;;  %v2744_v42 = vsel %vm1500_vm5, 1.0, %v3305_v22  ;;  %vm1498_vm7 = vcmp.eq.s32.totalorder %v1482_v9, 1  ;;  %vm1556_vm8 = vcmp.eq.s32.totalorder %v3948_v10, 1  ;;  %v1476_v9 = vld [vmem:[%s3398_s17 + $0x18] sm:$0xff] }
 0x204   : > { %v1154_v16 = vadd.f32 %v1120_v37, %v978_v53  ;;  %v1118_v36 = vpop.permute.xlu0 %1117  ;;  %v1547_v37 = vmul.f32 %v2743_v61, %v3942_v43  ;;  %vm1555_vm9 = vcmp.eq.s32.totalorder %v3948_v10, 0  ;;  %v2742_v2 = vsel %vm1498_vm7, 1.0, %v3305_v22 }
 0x205   : > { %v1153_v30 = vadd.f32 %v1118_v36, %v977_v0  ;;  %v1548_v36 = vmul.f32 %v2744_v42, %v3952_v41  ;;  %vm1492_vm15 = vcmp.eq.s32.totalorder %v1476_v9, 1 }
 0x206   : > { %3155 = vlog2.f32 %v1154_v16 }
 0x207   : > { %3157 = vlog2.f32 %v1153_v30  ;;  %v1108_v4 = vpop.permute.xlu1 %1107  ;;  %v2944_v15 = vpack.i.bf16 %v1548_v36, %v1547_v37 }
 0x208   : > { %v1148_v50 = vadd.f32 %v1108_v4, %v972_v63  ;;  %v1106_v17 = vpop.permute.xlu0 %1105 }
 0x209   : > { %v1147_v56 = vadd.f32 %v1106_v17, %v971_v8  ;;  %v2741_v17 = vsel %vm1497_vm6, 1.0, %v3305_v22 }
 0x20a   : > { %3159 = vlog2.f32 %v1148_v50  ;;  %v3968_v50 = vld [vmem:[%s3403_s28 + $0x48] sm:$0xff] }
 0x20b   : > { %3161 = vlog2.f32 %v1147_v56  ;;  %v1124_v48 = vpop.permute.xlu1 %1123 }
 0x20c   : > { %v1156_v18 = vadd.f32 %v1124_v48, %v980_v13  ;;  %v1122_v57 = vpop.permute.xlu0 %1121 }
 0x20d   : > { %v1155_v14 = vadd.f32 %v1122_v57, %v979_v21  ;;  %v1477_v57 = vld [vmem:[%s3398_s17 + $0x20] sm:$0xff] }
 0x20e   : > { %3163 = vlog2.f32 %v1156_v18  ;;  %vm1493_vm12 = vcmp.eq.s32.totalorder %v1477_v57, 1 }
 0x20f   : > { %v3152_v62 = vpop.eup %3151  ;;  %3165 = vlog2.f32 %v1155_v14  ;;  %v1478_v14 = vld [vmem:[%s3398_s17 + $0x28] sm:$0xff]  ;;  %v2737_v37 = vsel %vm1493_vm12, 1.0, %v3305_v22 }
 0x210   : > { %v3154_v38 = vpop.eup %3153  ;;  %v1168_v25 = vmul.f32 0.6931472, %v3152_v62  ;;  %vm1494_vm13 = vcmp.eq.s32.totalorder %v1478_v14, 1 }
 0x211   : > { %v1166_v6 = vmul.f32 0.6931472, %v3154_v38  ;;  %v1545_v38 = vmul.f32 %v2741_v17, %v3965_v45  ;;  %v2738_v54 = vsel %vm1494_vm13, 1.0, %v3305_v22 }
 0x212   : > { %1215 = vrot.lane.b32.xlu1 %v1168_v25, %s3301_s11  ;;  %v1546_v25 = vmul.f32 %v2742_v2, %v3968_v50 }
 0x213   : > { %v3156_v59 = vpop.eup %3155  ;;  %1213 = vrot.lane.b32.xlu0 %v1166_v6, %s3301_s11  ;;  %v2939_v6 = vpack.i.bf16 %v3856_v7, %v3853_v31 }
 0x214   : > { %v3158_v3 = vpop.eup %3157  ;;  %v1184_v26 = vmul.f32 0.6931472, %v3156_v59  ;;  %v1463_v59 = vld [vmem:[%s3403_s28 + $0x30] sm:$0xff]  ;;  %v2954_v31 = vpack.i.bf16 %v1546_v25, %v1545_v38  ;;  %v3306_v38 = vmov 1  }
 0x215   : > { %v1182_v29 = vmul.f32 0.6931472, %v3158_v3  ;;  %v1464_v3 = vld [vmem:[%s3403_s28 + $0x38] sm:$0xff] }
 0x216   : > { %1231 = vrot.lane.b32.xlu1 %v1184_v26, %s3301_s11  ;;  %v2739_v26 = vsel %vm1495_vm10, 1.0, %v3305_v22  ;;  %v2969_v2 = vpack.i.bf16 %v1464_v3, %v1463_v59 }
 0x217   : > { %v3160_v53 = vpop.eup %3159  ;;  %1229 = vrot.lane.b32.xlu0 %v1182_v29, %s3301_s11  ;;  %v2740_v29 = vsel %vm1496_vm11, 1.0, %v3305_v22  ;;  %v1543_v7 = vmul.f32 %v2739_v26, %v1463_v59 }
 0x218   : > { %v3162_v20 = vpop.eup %3161  ;;  %v1172_v0 = vmul.f32 0.6931472, %v3160_v53  ;;  %v2931_v49 = vpop.permute.xlu1 %2930  ;;  %v1544_v42 = vmul.f32 %v2740_v29, %v1464_v3  ;;  %v2949_v53 = vpack.i.bf16 %v3952_v41, %v3942_v43  ;;  %v2959_v43 = vpack.i.bf16 %v3968_v50, %v3965_v45  ;;  %v1459_v41 = vld [vmem:[%s3403_s28 + $0x10] sm:$0xff] }
 0x219   : > { %v1170_v16 = vmul.f32 0.6931472, %v3162_v20  ;;  %v2933_v30 = vunpack.i.h.bf16 %v2931_v49  ;;  %v2925_v63 = vpop.permute.xlu0 %2924  ;;  %v2932_v11 = vunpack.i.l.bf16 %v2931_v49  ;;  %v1461_v20 = vld [vmem:[%s3403_s28 + $0x20] sm:$0xff] }
 0x21a   : > { %1219 = vrot.lane.b32.xlu1 %v1172_v0, %s3301_s11  ;;  %v2927_v8 = vunpack.i.h.bf16 %v2925_v63  ;;  %v2926_v4 = vunpack.i.l.bf16 %v2925_v63  ;;  %v1462_v0 = vld [vmem:[%s3403_s28 + $0x28] sm:$0xff]  ;;  %v1473_v49 = vld [vmem:[%s3398_s17] sm:$0xff]  ;;  %v2964_v36 = vpack.i.bf16 %v1544_v42, %v1543_v7  ;;  %v1541_v58 = vmul.f32 %v2737_v37, %v1461_v20  ;;  %v1460_v63 = vld [vmem:[%s3403_s28 + $0x18] sm:$0xff] }
 0x21b   : > { %v3164_v5 = vpop.eup %3163  ;;  %1217 = vrot.lane.b32.xlu0 %v1170_v16, %s3301_s11  ;;  %v1474_v16 = vld [vmem:[%s3398_s17 + $0x8] sm:$0xff]  ;;  %vm1489_vm0 = vcmp.eq.s32.totalorder %v1473_v49, 1  ;;  %v2979_v57 = vpack.i.bf16 %v1462_v0, %v1461_v20 }
 0x21c   : > { %v3166_v56 = vpop.eup %3165  ;;  %v1188_v13 = vmul.f32 0.6931472, %v3164_v5  ;;  %v1652_v21 = vsel %vm1556_vm8, %v2927_v8, 0.0  ;;  %v1651_v48 = vsel %vm1556_vm8, %v2926_v4, 0.0  ;;  %v2736_v8 = vsel %vm1492_vm15, 1.0, %v3305_v22  ;;  %v4016_v25 = vpop.permute.xlu1 %2935 }
 0x21d   : > { %v1186_v18 = vmul.f32 0.6931472, %v3166_v56  ;;  %v1748_v62 = vsel %vm1555_vm9, %v2933_v30, %v1652_v21  ;;  %v1747_v19 = vsel %vm1555_vm9, %v2932_v11, %v1651_v48  ;;  %v1542_v30 = vmul.f32 %v2738_v54, %v1462_v0  ;;  %v1457_v56 = vld [vmem:[%s3403_s28] sm:$0xff] }
 0x21e   : > { %1235 = vrot.lane.b32.xlu1 %v1188_v13, %s3301_s11  ;;  %v1756_v61 = vpack.c.bf16 %v1748_v62, %v1747_v19  ;;  %v2735_v11 = vsel %vm1491_vm14, 1.0, %v3305_v22  ;;  %vm1490_vm1 = vcmp.eq.s32.totalorder %v1474_v16, 1  ;;  %v1540_v17 = vmul.f32 %v2736_v8, %v1460_v63  ;;  %v1458_v13 = vld [vmem:[%s3403_s28 + $0x8] sm:$0xff] }
 0x21f   : > { %1233 = vrot.lane.b32.xlu0 %v1186_v18, %s3301_s11  ;;  %v2974_v4 = vpack.i.bf16 %v1542_v30, %v1541_v58  ;;  %v1539_v5 = vmul.f32 %v2735_v11, %v1459_v41  ;;  %v2733_v21 = vsel %vm1489_vm0, 1.0, %v3305_v22  ;;  %v2734_v45 = vsel %vm1490_vm1, 1.0, %v3305_v22 }
 0x220   : > { %2816 = vmatprep.subr.bf16.mxu0 %v1756_v61  ;;  %2848 = vmatprep.subr.bf16.mxu1 %v1756_v61  ;;  %v1537_v48 = vmul.f32 %v2733_v21, %v1457_v56  ;;  %v1538_v18 = vmul.f32 %v2734_v45, %v1458_v13  ;;  %v2989_v62 = vpack.i.bf16 %v1460_v63, %v1459_v41 }
 0x221   : > { %2817 = vmatpush3.bf16.msra.mxu0 %v1756_v61  ;;  %2856 = vmatpush3.bf16.msra.mxu1 %v1756_v61  ;;  %v2984_v50 = vpack.i.bf16 %v1540_v17, %v1539_v5 }
 0x222   : > { %2945 = vperm.xlu1 %2928, %v2944_v15   ;;  %v2994_v14 = vpack.i.bf16 %v1538_v18, %v1537_v48  ;;  %v2999_v15 = vpack.i.bf16 %v1458_v13, %v1457_v56  ;;  %v2937_v48 = vunpack.i.l.bf16 %v4016_v25 }
 0x223   : > { %2940 = vperm.xlu0 %2922, %v2939_v6  }
 0x226   : > { %2955 = vperm.xlu1 %2928, %v2954_v31  }
 0x227   : > { %2950 = vperm.xlu0 %2922, %v2949_v53   ;;  %v1269_v53 = vld [vmem:[%s3382_s7] sm:$0xf]  ;;  %s3309_s7 = smov (!%p2765_p10), 127  }
 0x228   : > { %v1271_v20 = vrot.slane %v1269_v53, 1  ;;  %v1274_v37 = vrot.slane %v1269_v53, 2  ;;  %v1277_v54 = vrot.slane %v1269_v53, 3 }
 0x22a   : > { %2965 = vperm.xlu1 %2928, %v2964_v36   ;;  %v1273_v0 = vmax.f32 %v1269_v53, %v1271_v20 }
 0x22b   : > { %2960 = vperm.xlu0 %2922, %v2959_v43  }
 0x22e   : > { %2975 = vperm.xlu1 %2928, %v2974_v4  }
 0x22f   : > { %2970 = vperm.xlu0 %2922, %v2969_v2  }
 0x232   : > { %2985 = vperm.xlu1 %2928, %v2984_v50   ;;  %v2938_v50 = vunpack.i.h.bf16 %v4016_v25 }
 0x233   : > { %2980 = vperm.xlu0 %2922, %v2979_v57  }
 0x236   : > { %2995 = vperm.xlu1 %2928, %v2994_v14  }
 0x237   : > { %2990 = vperm.xlu0 %2922, %v2989_v62   ;;  %v1650_v62 = vsel %vm1556_vm8, %v2938_v50, 0.0 }
 0x23a   : > { %3004 = vset.pattern.permute.xlu1 %v3306_v38 }
 0x23b   : > { %3000 = vperm.xlu0 %2922, %v2999_v15   ;;  %v1649_v15 = vsel %vm1556_vm8, %v2937_v48, 0.0 }
 0x23f   : > { %3005 = vset.pattern.permute.xlu0 %v3306_v38 }
 0x254   : > { %v1208_v22 = vpop.permute.xlu1 %1207 }
 0x255   : > { %v1254_v19 = vsub.f32 %v3701_v27, %v1208_v22  ;;  %v1206_v6 = vpop.permute.xlu0 %1205 }
 0x256   : > { %v1253_v59 = vsub.f32 %v3704_v28, %v1206_v6 }
 0x257   : > { %1328 = vperm.xlu0 %3005, %v1254_v19  }
 0x258   : > { %1323 = vperm.xlu1 %3004, %v1253_v59   ;;  %v1224_v3 = vpop.permute.xlu1 %1223 }
 0x259   : > { %v1222_v26 = vpop.permute.xlu0 %1221  ;;  %v1262_v9 = vsub.f32 %v3709_v33, %v1224_v3  ;;  %v1276_v33 = vmax.f32 %v1273_v0, %v1274_v37 }
 0x25a   : > { %v1261_v29 = vsub.f32 %v3712_v34, %v1222_v26 }
 0x25c   : > { %1363 = vperm.xlu1 %3004, %v1261_v29   ;;  %v1212_v61 = vpop.permute.xlu1 %1211 }
 0x25d   : > { %v1210_v44 = vpop.permute.xlu0 %1209  ;;  %v1256_v7 = vsub.f32 %v3717_v39, %v1212_v61 }
 0x25e   : > { %v1255_v31 = vsub.f32 %v3720_v40, %v1210_v44  ;;  %v1279_v40 = vmax.f32 %v1276_v33, %v1277_v54 }
 0x260   : > { %1368 = vperm.xlu1 %3004, %v1262_v9   ;;  %1333 = vperm.xlu0 %3005, %v1255_v31   ;;  %v1228_v42 = vpop.permute.xlu1 %1227  ;;  %v1293_v63 = vrot.slane %v1279_v40, 6  ;;  %v1280_v4 = vsub.f32 %v1269_v53, %v1279_v40  ;;  %v1302_v2 = vrot.slane %v1279_v40, 5 }
 0x261   : > { %v1226_v27 = vpop.permute.xlu0 %1225  ;;  %v1264_v34 = vsub.f32 %v3725_v51, %v1228_v42 }
 0x262   : > { %v1263_v28 = vsub.f32 %v3728_v52, %v1226_v27  ;;  %v1284_v52 = vrot.slane %v1279_v40, 7  ;;  %v1295_v17 = vsub.f32 %v1269_v53, %v1293_v63  ;;  %v1281_v13 = vmul.f32 1.442695, %v1280_v4 }
 0x264   : > { %1338 = vperm.xlu1 %3004, %v1256_v7   ;;  %1373 = vperm.xlu0 %3005, %v1263_v28   ;;  %v4031_v41 = vsub.f32 %v1269_v53, %v1284_v52  ;;  %v1296_v45 = vmul.f32 1.442695, %v1295_v17 }
 0x266   : > { %v1287_v5 = vmul.f32 1.442695, %v4031_v41 }
 0x268   : > { %1378 = vperm.xlu1 %3004, %v1264_v34   ;;  %3167 = vpow2.f32 %v1287_v5 }
 0x269   : > { %3169 = vpow2.f32 %v1281_v13 }
 0x26a   : > { %3171 = vpow2.f32 %v1296_v45 }
 0x284   : > { %v1216_v49 = vpop.permute.xlu1 %1215 }
 0x285   : > { %v1258_v16 = vsub.f32 %v3767_v32, %v1216_v49  ;;  %v1214_v36 = vpop.permute.xlu0 %1213 }
 0x286   : > { %v1257_v39 = vsub.f32 %v3770_v35, %v1214_v36 }
 0x287   : > { %1348 = vperm.xlu1 %3004, %v1258_v16  }
 0x288   : > { %1343 = vperm.xlu0 %3005, %v1257_v39   ;;  %v1232_v58 = vpop.permute.xlu1 %1231 }
 0x289   : > { %v1266_v51 = vsub.f32 %v3777_v46, %v1232_v58  ;;  %v1230_v30 = vpop.permute.xlu0 %1229 }
 0x28a   : > { %v1265_v43 = vsub.f32 %v3780_v47, %v1230_v30 }
 0x28b   : > { %1388 = vperm.xlu1 %3004, %v1266_v51  }
 0x28c   : > { %1383 = vperm.xlu0 %3005, %v1265_v43   ;;  %v1220_v11 = vpop.permute.xlu1 %1219 }
 0x28d   : > { %v1260_v32 = vsub.f32 %v3787_v1, %v1220_v11  ;;  %v1218_v8 = vpop.permute.xlu0 %1217  ;;  %v1304_v1 = vsub.f32 %v1269_v53, %v1302_v2 }
 0x28e   : > { %v1259_v35 = vsub.f32 %v3790_v60, %v1218_v8 }
 0x28f   : > { %1358 = vperm.xlu1 %3004, %v1260_v32   ;;  %v1305_v60 = vmul.f32 1.442695, %v1304_v1 }
 0x290   : > { %1353 = vperm.xlu0 %3005, %v1259_v35   ;;  %v1236_v46 = vpop.permute.xlu1 %1235 }
 0x291   : > { %v1268_v47 = vsub.f32 %v3797_v23, %v1236_v46  ;;  %v1234_v56 = vpop.permute.xlu0 %1233  ;;  %3173 = vpow2.f32 %v1305_v60 }
 0x292   : > { %v1267_v21 = vsub.f32 %v3800_v24, %v1234_v56  ;;  %v3168_v24 = vpop.eup %3167 }
 0x293   : > { %1398 = vperm.xlu1 %3004, %v1268_v47   ;;  %v3170_v3 = vpop.eup %3169  ;;  %v1290_v26 = vrot.slane %v3168_v24, 1 }
 0x294   : > { %1393 = vperm.xlu0 %3005, %v1267_v21   ;;  %v3172_v44 = vpop.eup %3171 }
 0x295   : > { %v1292_v0 = vadd.f32 %v3170_v3, %v1290_v26  ;;  %v1299_v37 = vrot.slane %v3172_v44, 2 }
 0x297   : > { %v1301_v63 = vadd.f32 %v1299_v37, %v1292_v0 }
 0x298   : > { %3006 = vset.pattern.permute.xlu0 %v3304_v55 }
 0x29d   : > { %v2946_v23 = vpop.permute.xlu1 %2945 }
 0x29e   : > { %v2941_v18 = vpop.permute.xlu0 %2940  ;;  %v2948_v38 = vunpack.i.h.bf16 %v2946_v23  ;;  %v2947_v22 = vunpack.i.l.bf16 %v2946_v23  ;;  %v3174_v40 = vpop.eup %3173 }
 0x29f   : > { %v2943_v57 = vunpack.i.h.bf16 %v2941_v18  ;;  %v2942_v14 = vunpack.i.l.bf16 %v2941_v18  ;;  %v1308_v11 = vrot.slane %v3174_v40, 3  ;;  %v3307_v40 = vmov 1.0|1.0  }
 0x2a0   : > { %v1648_v9 = vsel %vm1556_vm8, %v2948_v38, 0.0  ;;  %v1647_v31 = vsel %vm1556_vm8, %v2947_v22, 0.0 }
 0x2a1   : > { %v1746_v55 = vsel %vm1555_vm9, %v2943_v57, %v1650_v62  ;;  %v1745_v19 = vsel %vm1555_vm9, %v2942_v14, %v1649_v15  ;;  %v2956_v25 = vpop.permute.xlu1 %2955  ;;  %v1310_v21 = vadd.f32 %v1308_v11, %v1301_v63 }
 0x2a2   : > { %v1755_v6 = vpack.c.bf16 %v1746_v55, %v1745_v19  ;;  %v2951_v59 = vpop.permute.xlu0 %2950  ;;  %v2958_v27 = vunpack.i.h.bf16 %v2956_v25  ;;  %v2957_v7 = vunpack.i.l.bf16 %v2956_v25 }
 0x2a3   : > { %v2953_v29 = vunpack.i.h.bf16 %v2951_v59  ;;  %v2952_v61 = vunpack.i.l.bf16 %v2951_v59  ;;  %3175 = vlog2.f32 %v1310_v21  ;;  %v1758_v21 = vld [vmem:[#allocation2] sm:$0xff] }
 0x2a4   : > { %2818 = vmatprep.subr.bf16.mxu0 %v1755_v6  ;;  %2849 = vmatprep.subr.bf16.mxu1 %v1755_v6  ;;  %v1646_v49 = vsel %vm1556_vm8, %v2958_v27, 0.0  ;;  %v1645_v16 = vsel %vm1556_vm8, %v2957_v7, 0.0 }
 0x2a5   : > { %v1744_v28 = vsel %vm1555_vm9, %v2953_v29, %v1648_v9  ;;  %v1743_v42 = vsel %vm1555_vm9, %v2952_v61, %v1647_v31  ;;  %2819 = vmatpush3.bf16.msra.mxu0 %v1755_v6  ;;  %2857 = vmatpush3.bf16.msra.mxu1 %v1755_v6  ;;  %v2966_v34 = vpop.permute.xlu1 %2965 }
 0x2a6   : > { %v1754_v53 = vpack.c.bf16 %v1744_v28, %v1743_v42  ;;  %v2961_v20 = vpop.permute.xlu0 %2960  ;;  %v2968_v36 = vunpack.i.h.bf16 %v2966_v34  ;;  %v2967_v39 = vunpack.i.l.bf16 %v2966_v34 }
 0x2a7   : > { %v2963_v33 = vunpack.i.h.bf16 %v2961_v20  ;;  %v2962_v54 = vunpack.i.l.bf16 %v2961_v20 }
 0x2a8   : > { %2820 = vmatprep.subr.bf16.mxu0 %v1754_v53  ;;  %2850 = vmatprep.subr.bf16.mxu1 %v1754_v53  ;;  %v1644_v4 = vsel %vm1556_vm8, %v2968_v36, 0.0  ;;  %v1643_v35 = vsel %vm1556_vm8, %v2967_v39, 0.0 }
 0x2a9   : > { %v1742_v52 = vsel %vm1555_vm9, %v2963_v33, %v1646_v49  ;;  %v1741_v58 = vsel %vm1555_vm9, %v2962_v54, %v1645_v16  ;;  %2821 = vmatpush3.bf16.msra.mxu0 %v1754_v53  ;;  %2858 = vmatpush3.bf16.msra.mxu1 %v1754_v53  ;;  %v2976_v51 = vpop.permute.xlu1 %2975  ;;  %v4098_v53 = vshrl.u32 %v1317_v12, 7 }
 0x2aa   : > { %v1753_v30 = vpack.c.bf16 %v1742_v52, %v1741_v58  ;;  %v2971_v43 = vpop.permute.xlu0 %2970  ;;  %v2978_v5 = vunpack.i.h.bf16 %v2976_v51  ;;  %v2977_v17 = vunpack.i.l.bf16 %v2976_v51 }
 0x2ab   : > { %v2973_v32 = vunpack.i.h.bf16 %v2971_v43  ;;  %v2972_v8 = vunpack.i.l.bf16 %v2971_v43  ;;  %v1319_v0 = vsub.s32 1, %v4098_v53 }
 0x2ac   : > { %2822 = vmatprep.subr.bf16.mxu0 %v1753_v30  ;;  %2851 = vmatprep.subr.bf16.mxu1 %v1753_v30  ;;  %v1642_v60 = vsel %vm1556_vm8, %v2978_v5, 0.0  ;;  %v1641_v50 = vsel %vm1556_vm8, %v2977_v17, 0.0 }
 0x2ad   : > { %v1740_v2 = vsel %vm1555_vm9, %v2973_v32, %v1644_v4  ;;  %v1739_v46 = vsel %vm1555_vm9, %v2972_v8, %v1643_v35  ;;  %2823 = vmatpush3.bf16.msra.mxu0 %v1753_v30  ;;  %2859 = vmatpush3.bf16.msra.mxu1 %v1753_v30  ;;  %v2986_v47 = vpop.permute.xlu1 %2985  ;;  %v1759_v8 = vld [vmem:[#allocation2 + $0x58] sm:$0xff]  ;;  %v1757_v35 = vld [vmem:[#allocation2 + $0x30] sm:$0xff] }
 0x2ae   : > { %v1752_v56 = vpack.c.bf16 %v1740_v2, %v1739_v46  ;;  %v2981_v13 = vpop.permute.xlu0 %2980  ;;  %v2988_v48 = vunpack.i.h.bf16 %v2986_v47  ;;  %v2987_v23 = vunpack.i.l.bf16 %v2986_v47  ;;  %v1760_v2 = vld [vmem:[#allocation2 + $0x18] sm:$0xff]  ;;  %v1767_v46 = vld [vmem:[#allocation2 + $0x10] sm:$0xff] }
 0x2af   : > { %v2983_v45 = vunpack.i.h.bf16 %v2981_v13  ;;  %v2982_v1 = vunpack.i.l.bf16 %v2981_v13 }
 0x2b0   : > { %2824 = vmatprep.subr.bf16.mxu0 %v1752_v56  ;;  %2852 = vmatprep.subr.bf16.mxu1 %v1752_v56  ;;  %v1640_v22 = vsel %vm1556_vm8, %v2988_v48, 0.0  ;;  %v1639_v55 = vsel %vm1556_vm8, %v2987_v23, 0.0  ;;  %v3176_v28 = vpop.eup %3175  ;;  %v1768_v23 = vld [vmem:[#allocation2 + $0x38] sm:$0xff] }
 0x2b1   : > { %v1738_v18 = vsel %vm1555_vm9, %v2983_v45, %v1642_v60  ;;  %v1737_v57 = vsel %vm1555_vm9, %v2982_v1, %v1641_v50  ;;  %2825 = vmatpush3.bf16.msra.mxu0 %v1752_v56  ;;  %2860 = vmatpush3.bf16.msra.mxu1 %v1752_v56  ;;  %v2996_v14 = vpop.permute.xlu1 %2995  ;;  %v1312_v42 = vmul.f32 0.6931472, %v3176_v28  ;;  %v1765_v45 = vld [vmem:[#allocation2 + $0x40] sm:$0xff] }
 0x2b2   : > { %v1751_v24 = vpack.c.bf16 %v1738_v18, %v1737_v57  ;;  %v2991_v62 = vpop.permute.xlu0 %2990  ;;  %v2998_v19 = vunpack.i.h.bf16 %v2996_v14  ;;  %v2997_v25 = vunpack.i.l.bf16 %v2996_v14 }
 0x2b3   : > { %v2993_v15 = vunpack.i.h.bf16 %v2991_v62  ;;  %v2992_v38 = vunpack.i.l.bf16 %v2991_v62  ;;  %v1314_v34 = vrot.slane %v1312_v42, 7  ;;  %v1772_v42 = vld [vmem:[#allocation2 + $0x28] sm:$0xff] }
 0x2b4   : > { %2826 = vmatprep.subr.bf16.mxu0 %v1751_v24  ;;  %2853 = vmatprep.subr.bf16.mxu1 %v1751_v24  ;;  %v1638_v44 = vsel %vm1556_vm8, %v2998_v19, 0.0  ;;  %v1637_v9 = vsel %vm1556_vm8, %v2997_v25, 0.0  ;;  %v1761_v19 = vld [vmem:[#allocation2 + $0x50] sm:$0xff] }
 0x2b5   : > { %v1736_v6 = vsel %vm1555_vm9, %v2993_v15, %v1640_v22  ;;  %v1735_v59 = vsel %vm1555_vm9, %v2992_v38, %v1639_v55  ;;  %2827 = vmatpush3.bf16.msra.mxu0 %v1751_v24  ;;  %2861 = vmatpush3.bf16.msra.mxu1 %v1751_v24  ;;  %v1316_v20 = vsub.f32 %v4031_v41, %v1314_v34  ;;  %v1766_v24 = vld [vmem:[#allocation2 + $0x20] sm:$0xff]  ;;  %v1763_v22 = vld [vmem:[#allocation2 + $0x8] sm:$0xff] }
 0x2b6   : > { %v1750_v3 = vpack.c.bf16 %v1736_v6, %v1735_v59  ;;  %v3001_v26 = vpop.permute.xlu0 %3000  ;;  %v1764_v59 = vld [vmem:[#allocation2 + $0x48] sm:$0xff] }
 0x2b7   : > { %v3003_v29 = vunpack.i.h.bf16 %v3001_v26  ;;  %v3002_v61 = vunpack.i.l.bf16 %v3001_v26  ;;  %v1320_v37 = vrot.slane %v1316_v20, %v1319_v0 }
 0x2b8   : > { %2828 = vmatprep.subr.bf16.mxu0 %v1750_v3  ;;  %2854 = vmatprep.subr.bf16.mxu1 %v1750_v3 }
 0x2b9   : > { %v1734_v31 = vsel %vm1555_vm9, %v3003_v29, %v1638_v44  ;;  %v1733_v27 = vsel %vm1555_vm9, %v3002_v61, %v1637_v9  ;;  %2829 = vmatpush3.bf16.msra.mxu0 %v1750_v3  ;;  %2862 = vmatpush3.bf16.msra.mxu1 %v1750_v3  ;;  %v1771_v3 = vld [vmem:[#allocation2 + $0x78] sm:$0xff]  ;;  %v1762_v44 = vld [vmem:[#allocation2 + $0x68] sm:$0xff]  ;;  %v1769_v9 = vld [vmem:[#allocation2 + $0x60] sm:$0xff] }
 0x2ba   : > { %v1749_v7 = vpack.c.bf16 %v1734_v31, %v1733_v27 }
 0x2bc   : > { %2830 = vmatprep.subr.bf16.mxu0 %v1749_v7  ;;  %2855 = vmatprep.subr.bf16.mxu1 %v1749_v7 }
 0x2bd   : > { %2831 = vmatpush3.bf16.msra.mxu0 %v1749_v7  ;;  %2863 = vmatpush3.bf16.msra.mxu1 %v1749_v7 }
 0x2d2   : > { %v1329_v33 = vpop.permute.xlu0 %1328 }
 0x2d3   : > { %v1324_v54 = vpop.permute.xlu1 %1323  ;;  %vm1402_vm2 = vcmp.ge.f32.partialorder %v1320_v37, %v1329_v33 }
 0x2d4   : > { %vm1401_vm3 = vcmp.ge.f32.partialorder %v1320_v37, %v1324_v54 }
 0x2d5   : > { %vm2749_vm4 = vmpackc.low %vm1402_vm2, %vm1401_vm3 }
 0x2d6   : > { %2832 = vmatprep.mubr.msk.bf16.mxu0 %vm2749_vm4, %v3307_v40 }
 0x2d7   : > { %v1364_v49 = vpop.permute.xlu1 %1363 }
 0x2d8   : > { %vm1409_vm5 = vcmp.ge.f32.partialorder %v1320_v37, %v1364_v49 }
 0x2db   : > { %v1369_v16 = vpop.permute.xlu1 %1368  ;;  %v1334_v36 = vpop.permute.xlu0 %1333 }
 0x2dc   : > { %vm1410_vm6 = vcmp.ge.f32.partialorder %v1320_v37, %v1369_v16  ;;  %vm1403_vm10 = vcmp.ge.f32.partialorder %v1320_v37, %v1334_v36 }
 0x2dd   : > { %vm2757_vm7 = vmpackc.low %vm1410_vm6, %vm1409_vm5 }
 0x2de   : > { %2840 = vmatprep.mubr.msk.bf16.mxu1 %vm2757_vm7, %v3307_v40 }
 0x2df   : > { %v1339_v12 = vpop.permute.xlu1 %1338  ;;  %v1374_v41 = vpop.permute.xlu0 %1373 }
 0x2e0   : > { %vm1404_vm11 = vcmp.ge.f32.partialorder %v1320_v37, %v1339_v12  ;;  %vm1411_vm13 = vcmp.ge.f32.partialorder %v1320_v37, %v1374_v41 }
 0x2e1   : > { %vm2751_vm12 = vmpackc.low %vm1404_vm11, %vm1403_vm10 }
 0x2e2   : > { %2833 = vmatmul.mubr.msk.bf16.vlgmr.msra.gmra.mxu0 %vm2751_vm12, %v3307_v40 }
 0x2e3   : > { %v1379_v39 = vpop.permute.xlu1 %1378 }
 0x2e4   : > { %vm1412_vm14 = vcmp.ge.f32.partialorder %v1320_v37, %v1379_v39 }
 0x2e5   : > { %vm2759_vm15 = vmpackc.low %vm1412_vm14, %vm1411_vm13 }
 0x2e6   : > { %2841 = vmatmul.mubr.msk.bf16.vlgmr.msra.gmra.mxu1 %vm2759_vm15, %v3307_v40 }
 0x302   : > { %v1349_v52 = vpop.permute.xlu1 %1348 }
 0x303   : > { %vm1406_vm0 = vcmp.ge.f32.partialorder %v1320_v37, %v1349_v52  ;;  %v1344_v58 = vpop.permute.xlu0 %1343 }
 0x304   : > { %vm1405_vm1 = vcmp.ge.f32.partialorder %v1320_v37, %v1344_v58 }
 0x305   : > { %vm2753_vm2 = vmpackc.low %vm1406_vm0, %vm1405_vm1 }
 0x306   : > { %2836 = vmatprep.mubr.msk.bf16.mxu0 %vm2753_vm2, %v3307_v40  ;;  %v1389_v51 = vpop.permute.xlu1 %1388 }
 0x307   : > { %vm1414_vm3 = vcmp.ge.f32.partialorder %v1320_v37, %v1389_v51  ;;  %v1384_v30 = vpop.permute.xlu0 %1383 }
 0x308   : > { %vm1413_vm4 = vcmp.ge.f32.partialorder %v1320_v37, %v1384_v30 }
 0x309   : > { %vm2761_vm5 = vmpackc.low %vm1414_vm3, %vm1413_vm4 }
 0x30a   : > { %2844 = vmatprep.mubr.msk.bf16.mxu1 %vm2761_vm5, %v3307_v40  ;;  %v1359_v43 = vpop.permute.xlu1 %1358 }
 0x30b   : > { %vm1408_vm6 = vcmp.ge.f32.partialorder %v1320_v37, %v1359_v43  ;;  %v1354_v63 = vpop.permute.xlu0 %1353 }
 0x30c   : > { %vm1407_vm7 = vcmp.ge.f32.partialorder %v1320_v37, %v1354_v63 }
 0x30d   : > { %vm2755_vm10 = vmpackc.low %vm1408_vm6, %vm1407_vm7 }
 0x30e   : > { %2837 = vmatmul.mubr.msk.bf16.gmra.mxu0 %vm2755_vm10, %v3307_v40  ;;  %v1399_v11 = vpop.permute.xlu1 %1398 }
 0x30f   : > { %vm1416_vm11 = vcmp.ge.f32.partialorder %v1320_v37, %v1399_v11  ;;  %v1394_v32 = vpop.permute.xlu0 %1393 }
 0x310   : > { %vm1415_vm12 = vcmp.ge.f32.partialorder %v1320_v37, %v1394_v32  ;;  %v1770_v37 = vld [vmem:[#allocation2 + $0x70] sm:$0xff] }
 0x311   : > { %vm2763_vm13 = vmpackc.low %vm1416_vm11, %vm1415_vm12 }
 0x312   : > { %2845 = vmatmul.mubr.msk.bf16.gmra.mxu1 %vm2763_vm13, %v3307_v40 }
 0x3a2   : > { %v2834_v4 = vpop.f32.mrf.mxu0 }
 0x3a3   : > { %v1872_v5 = vadd.f32 %v2834_v4, %v1759_v8 }
 0x3a4   : > { %v1807_v17 = vpop.f32.mrf.mxu0 }
 0x3a5   : > { %1888 = vst [vmem:[#allocation2 + $0x58] sm:$0xff] %v1872_v5  ;;  %v1870_v47 = vadd.f32 %v1807_v17, %v1757_v35 }
 0x3a6   : > { %v2835_v56 = vpop.f32.mrf.mxu0  ;;  %v2842_v13 = vpop.f32.mrf.mxu1 }
 0x3a7   : > { %1886 = vst [vmem:[#allocation2 + $0x30] sm:$0xff] %v1870_v47  ;;  %v1873_v1 = vadd.f32 %v2835_v56, %v1760_v2  ;;  %v1880_v60 = vadd.f32 %v2842_v13, %v1767_v46 }
 0x3a8   : > { %v1810_v50 = vpop.f32.mrf.mxu0  ;;  %v1839_v48 = vpop.f32.mrf.mxu1 }
 0x3a9   : > { %1889 = vst [vmem:[#allocation2 + $0x18] sm:$0xff] %v1873_v1  ;;  %1896 = vst [vmem:[#allocation2 + $0x10] sm:$0xff] %v1880_v60  ;;  %v1871_v18 = vadd.f32 %v1810_v50, %v1758_v21  ;;  %v1878_v57 = vadd.f32 %v1839_v48, %v1765_v45 }
 0x3aa   : > { %v2843_v14 = vpop.f32.mrf.mxu1 }
 0x3ab   : > { %1887 = vst [vmem:[#allocation2] sm:$0xff] %v1871_v18  ;;  %1894 = vst [vmem:[#allocation2 + $0x40] sm:$0xff] %v1878_v57  ;;  %v1881_v62 = vadd.f32 %v2843_v14, %v1768_v23 }
 0x3ac   : > { %v1842_v15 = vpop.f32.mrf.mxu1 }
 0x3ad   : > { %1897 = vst [vmem:[#allocation2 + $0x38] sm:$0xff] %v1881_v62  ;;  %v1879_v38 = vadd.f32 %v1842_v15, %v1766_v24 }
 0x3af   : > { %1895 = vst [vmem:[#allocation2 + $0x20] sm:$0xff] %v1879_v38 }
 0x3ce   : > { %v2838_v55 = vpop.f32.mrf.mxu0 }
 0x3cf   : > { %v1876_v25 = vadd.f32 %v2838_v55, %v1763_v22 }
 0x3d0   : > { %v1823_v6 = vpop.f32.mrf.mxu0 }
 0x3d1   : > { %1892 = vst [vmem:[#allocation2 + $0x8] sm:$0xff] %v1876_v25  ;;  %v1874_v26 = vadd.f32 %v1823_v6, %v1761_v19 }
 0x3d2   : > { %v2839_v29 = vpop.f32.mrf.mxu0  ;;  %v2846_v61 = vpop.f32.mrf.mxu1 }
 0x3d3   : > { %1890 = vst [vmem:[#allocation2 + $0x50] sm:$0xff] %v1874_v26  ;;  %v1877_v31 = vadd.f32 %v2839_v29, %v1764_v59  ;;  %v1884_v27 = vadd.f32 %v2846_v61, %v1771_v3 }
 0x3d4   : > { %v1826_v7 = vpop.f32.mrf.mxu0  ;;  %v1855_v28 = vpop.f32.mrf.mxu1 }
 0x3d5   : > { %1893 = vst [vmem:[#allocation2 + $0x48] sm:$0xff] %v1877_v31  ;;  %1900 = vst [vmem:[#allocation2 + $0x78] sm:$0xff] %v1884_v27  ;;  %v1875_v34 = vadd.f32 %v1826_v7, %v1762_v44  ;;  %v1882_v20 = vadd.f32 %v1855_v28, %v1769_v9 }
 0x3d6   : > { %v2847_v0 = vpop.f32.mrf.mxu1 }
 0x3d7   : > { %1891 = vst [vmem:[#allocation2 + $0x68] sm:$0xff] %v1875_v34  ;;  %1898 = vst [vmem:[#allocation2 + $0x60] sm:$0xff] %v1882_v20  ;;  %v1885_v33 = vadd.f32 %v2847_v0, %v1772_v42  ;;  %1905 = sbr.rel (%p2765_p10) target bundleno = 1726 (0x6be), region = 48 }
 0x3d8   : > { %v1858_v54 = vpop.f32.mrf.mxu1 }
 0x3d9   : > { %1901 = vst [vmem:[#allocation2 + $0x28] sm:$0xff] %v1885_v33  ;;  %v1883_v40 = vadd.f32 %v1858_v54, %v1770_v37 }
 0x3db   : > { %1899 = vst [vmem:[#allocation2 + $0x70] sm:$0xff] %v1883_v40 }
 0x3dc   : > { %v4103_v49 = vld [vmem:[#allocation2 + $0x30] sm:$0xff]  ;;  %v4105_v16 = vld [vmem:[#allocation2 + $0x58] sm:$0xff]  ;;  %v4107_v36 = vld [vmem:[#allocation2] sm:$0xff] }
 0x3dd   : > { %v4110_v12 = vadd.f32 -1.0, %v4103_v49  ;;  %v4113_v41 = vadd.f32 -1.0, %v4105_v16  ;;  %v4116_v39 = vadd.f32 -1.0, %v4107_v36  ;;  %v4118_v52 = vld [vmem:[#allocation2 + $0x18] sm:$0xff]  ;;  %v4120_v58 = vld [vmem:[#allocation2 + $0x50] sm:$0xff]  ;;  %v4139_v35 = vld [vmem:[#allocation2 + $0x8] sm:$0xff] }
 0x3de   : > { %v4123_v51 = vadd.f32 -1.0, %v4118_v52  ;;  %v4125_v30 = vld [vmem:[#allocation2 + $0x68] sm:$0xff]  ;;  %v4133_v32 = vadd.f32 -1.0, %v4120_v58  ;;  %v4147_v2 = vadd.f32 -1.0, %v4139_v35  ;;  %v4153_v56 = vld [vmem:[#allocation2 + $0x40] sm:$0xff]  ;;  %v4167_v50 = vld [vmem:[#allocation2 + $0x10] sm:$0xff] }
 0x3df   : > { %v2130_v43 = vmax.f32 %v4110_v12, 1.0  ;;  %v2132_v63 = vmax.f32 %v4113_v41, 1.0  ;;  %v2131_v11 = vmax.f32 %v4116_v39, 1.0  ;;  %v4137_v4 = vadd.f32 -1.0, %v4125_v30  ;;  %v4141_v5 = vld [vmem:[#allocation2 + $0x48] sm:$0xff]  ;;  %v4155_v13 = vld [vmem:[#allocation2 + $0x20] sm:$0xff] }
 0x3e0   : > { %v2133_v8 = vmax.f32 %v4123_v51, 1.0  ;;  %v2134_v17 = vmax.f32 %v4133_v32, 1.0  ;;  %v4151_v47 = vadd.f32 -1.0, %v4141_v5  ;;  %v2136_v21 = vmax.f32 %v4147_v2, 1.0  ;;  %v4169_v48 = vld [vmem:[#allocation2 + $0x38] sm:$0xff]  ;;  %v4181_v24 = vld [vmem:[#allocation2 + $0x60] sm:$0xff] }
 0x3e1   : > { %2162 = vrot.lane.b32.xlu0 %v2130_v43, %s3308_s18  ;;  %2166 = vrot.lane.b32.xlu1 %v2132_v63, %s3308_s18  ;;  %v2135_v46 = vmax.f32 %v4137_v4, 1.0  ;;  %v4160_v45 = vadd.f32 -1.0, %v4153_v56  ;;  %v4165_v60 = vadd.f32 -1.0, %v4155_v13  ;;  %v4174_v18 = vadd.f32 -1.0, %v4167_v50  ;;  %v4195_v19 = vld [vmem:[#allocation2 + $0x78] sm:$0xff]  ;;  %v4197_v25 = vld [vmem:[#allocation2 + $0x28] sm:$0xff] }
 0x3e2   : > { %v2137_v1 = vmax.f32 %v4151_v47, 1.0  ;;  %v4179_v14 = vadd.f32 -1.0, %v4169_v48  ;;  %v4183_v62 = vld [vmem:[#allocation2 + $0x70] sm:$0xff]  ;;  %v4188_v38 = vadd.f32 -1.0, %v4181_v24  ;;  %v4203_v59 = vadd.f32 -1.0, %v4195_v19 }
 0x3e3   : > { %v2138_v23 = vmax.f32 %v4160_v45, 1.0  ;;  %v2139_v57 = vmax.f32 %v4165_v60, 1.0  ;;  %v2140_v15 = vmax.f32 %v4174_v18, 1.0  ;;  %v4193_v55 = vadd.f32 -1.0, %v4183_v62 }
 0x3e4   : > { %v2141_v22 = vmax.f32 %v4179_v14, 1.0  ;;  %v2142_v6 = vmax.f32 %v4188_v38, 1.0  ;;  %v4207_v26 = vadd.f32 -1.0, %v4197_v25  ;;  %v2144_v29 = vmax.f32 %v4203_v59, 1.0 }
 0x3e5   : > { %2164 = vrot.lane.b32.xlu0 %v2131_v11, %s3308_s18  ;;  %2168 = vrot.lane.b32.xlu1 %v2133_v8, %s3308_s18  ;;  %v2143_v3 = vmax.f32 %v4193_v55, 1.0  ;;  %v1986_v44 = vmax.f32 %v4103_v49, 1.0  ;;  %v1987_v9 = vmax.f32 %v4107_v36, 1.0  ;;  %vm2098_vm14 = vcmp.gt.f32.partialorder %v4103_v49, 1.0 }
 0x3e6   : > { %v2145_v61 = vmax.f32 %v4207_v26, 1.0  ;;  %vm2099_vm15 = vcmp.gt.f32.partialorder %v4107_v36, 1.0  ;;  %vm2100_vm0 = vcmp.gt.f32.partialorder %v4105_v16, 1.0  ;;  %vm2101_vm1 = vcmp.gt.f32.partialorder %v4118_v52, 1.0 }
 0x3e7   : > { %vm2102_vm2 = vcmp.gt.f32.partialorder %v4120_v58, 1.0  ;;  %vm2106_vm3 = vcmp.gt.f32.partialorder %v4153_v56, 1.0  ;;  %vm2103_vm4 = vcmp.gt.f32.partialorder %v4125_v30, 1.0  ;;  %vm2108_vm5 = vcmp.gt.f32.partialorder %v4167_v50, 1.0 }
 0x3e8   : > { %vm2104_vm6 = vcmp.gt.f32.partialorder %v4139_v35, 1.0  ;;  %vm2110_vm7 = vcmp.gt.f32.partialorder %v4181_v24, 1.0  ;;  %vm2105_vm10 = vcmp.gt.f32.partialorder %v4141_v5, 1.0  ;;  %vm2112_vm11 = vcmp.gt.f32.partialorder %v4195_v19, 1.0 }
 0x3e9   : > { %2170 = vrot.lane.b32.xlu0 %v2134_v17, %s3308_s18  ;;  %2172 = vrot.lane.b32.xlu1 %v2135_v46, %s3308_s18  ;;  %vm2107_vm12 = vcmp.gt.f32.partialorder %v4155_v13, 1.0  ;;  %vm2109_vm13 = vcmp.gt.f32.partialorder %v4169_v48, 1.0 }
 0x3ed   : > { %2174 = vrot.lane.b32.xlu0 %v2136_v21, %s3308_s18  ;;  %2176 = vrot.lane.b32.xlu1 %v2137_v1, %s3308_s18 }
 0x3f1   : > { %2178 = vrot.lane.b32.xlu0 %v2138_v23, %s3308_s18  ;;  %2180 = vrot.lane.b32.xlu1 %v2139_v57, %s3308_s18 }
 0x3f5   : > { %2182 = vrot.lane.b32.xlu0 %v2140_v15, %s3308_s18  ;;  %2184 = vrot.lane.b32.xlu1 %v2141_v22, %s3308_s18 }
 0x3f9   : > { %2186 = vrot.lane.b32.xlu0 %v2142_v6, %s3308_s18  ;;  %2188 = vrot.lane.b32.xlu1 %v2143_v3, %s3308_s18 }
 0x3fd   : > { %2190 = vrot.lane.b32.xlu0 %v2144_v29, %s3308_s18  ;;  %2192 = vrot.lane.b32.xlu1 %v2145_v61, %s3308_s18 }
 0x401   : > { %2018 = vrot.lane.b32.xlu0 %v1986_v44, %s3308_s18  ;;  %2020 = vrot.lane.b32.xlu1 %v1987_v9, %s3308_s18 }
 0x453   : > { %v2163_v31 = vpop.permute.xlu0 %2162  ;;  %v2167_v27 = vpop.permute.xlu1 %2166 }
 0x454   : > { %3193 = vrcp.f32 %v2163_v31 }
 0x455   : > { %3195 = vrcp.f32 %v2167_v27 }
 0x457   : > { %v2165_v7 = vpop.permute.xlu0 %2164  ;;  %v2169_v28 = vpop.permute.xlu1 %2168 }
 0x458   : > { %3197 = vrcp.f32 %v2165_v7 }
 0x459   : > { %3199 = vrcp.f32 %v2169_v28 }
 0x45b   : > { %v2171_v42 = vpop.permute.xlu0 %2170  ;;  %v2173_v34 = vpop.permute.xlu1 %2172 }
 0x45c   : > { %3201 = vrcp.f32 %v2171_v42 }
 0x45d   : > { %3203 = vrcp.f32 %v2173_v34 }
 0x45f   : > { %v2175_v20 = vpop.permute.xlu0 %2174  ;;  %v2177_v0 = vpop.permute.xlu1 %2176 }
 0x460   : > { %3205 = vrcp.f32 %v2175_v20  ;;  %v1988_v20 = vmax.f32 %v4105_v16, 1.0 }
 0x461   : > { %v3194_v37 = vpop.eup %3193  ;;  %3207 = vrcp.f32 %v2177_v0  ;;  %v1991_v0 = vmax.f32 %v4125_v30, 1.0 }
 0x462   : > { %v3196_v33 = vpop.eup %3195  ;;  %v2211_v54 = vmul.f32 %v3194_v37, %v4110_v12  ;;  %v1993_v37 = vmax.f32 %v4141_v5, 1.0 }
 0x463   : > { %v2179_v40 = vpop.permute.xlu0 %2178  ;;  %v2181_v43 = vpop.permute.xlu1 %2180  ;;  %v2215_v63 = vmul.f32 %v3196_v33, %v4113_v41  ;;  %v1996_v33 = vmax.f32 %v4167_v50, 1.0 }
 0x464   : > { %3209 = vrcp.f32 %v2179_v40  ;;  %2258 = vrot.lane.b32.xlu0 %v2211_v54, %s3309_s7  ;;  %v1995_v54 = vmax.f32 %v4155_v13, 1.0  ;;  %v1997_v40 = vmax.f32 %v4169_v48, 1.0 }
 0x465   : > { %v3198_v11 = vpop.eup %3197  ;;  %3211 = vrcp.f32 %v2181_v43  ;;  %v1998_v43 = vmax.f32 %v4181_v24, 1.0 }
 0x466   : > { %v3200_v8 = vpop.eup %3199  ;;  %v2213_v17 = vmul.f32 %v3198_v11, %v4116_v39 }
 0x467   : > { %v2183_v46 = vpop.permute.xlu0 %2182  ;;  %v2185_v21 = vpop.permute.xlu1 %2184  ;;  %v2217_v12 = vmul.f32 %v3200_v8, %v4123_v51 }
 0x468   : > { %3213 = vrcp.f32 %v2183_v46  ;;  %2260 = vrot.lane.b32.xlu1 %v2213_v17, %s3309_s7  ;;  %2262 = vrot.lane.b32.xlu0 %v2215_v63, %s3309_s7  ;;  %v1999_v46 = vmax.f32 %v4183_v62, 1.0 }
 0x469   : > { %v3202_v1 = vpop.eup %3201  ;;  %3215 = vrcp.f32 %v2185_v21 }
 0x46a   : > { %v3204_v23 = vpop.eup %3203  ;;  %v2219_v57 = vmul.f32 %v3202_v1, %v4133_v32 }
 0x46b   : > { %v2187_v41 = vpop.permute.xlu0 %2186  ;;  %v2189_v15 = vpop.permute.xlu1 %2188  ;;  %v2221_v39 = vmul.f32 %v3204_v23, %v4137_v4  ;;  %v2000_v23 = vmax.f32 %v4195_v19, 1.0 }
 0x46c   : > { %2266 = vrot.lane.b32.xlu0 %v2219_v57, %s3309_s7  ;;  %3217 = vrcp.f32 %v2187_v41  ;;  %2264 = vrot.lane.b32.xlu1 %v2217_v12, %s3309_s7 }
 0x46d   : > { %v3206_v22 = vpop.eup %3205  ;;  %3219 = vrcp.f32 %v2189_v15 }
 0x46e   : > { %v3208_v6 = vpop.eup %3207  ;;  %v2223_v3 = vmul.f32 %v3206_v22, %v4147_v2 }
 0x46f   : > { %v2191_v51 = vpop.permute.xlu0 %2190  ;;  %v2193_v29 = vpop.permute.xlu1 %2192  ;;  %v2225_v32 = vmul.f32 %v3208_v6, %v4151_v47 }
 0x470   : > { %2270 = vrot.lane.b32.xlu0 %v2223_v3, %s3309_s7  ;;  %2268 = vrot.lane.b32.xlu1 %v2221_v39, %s3309_s7  ;;  %3221 = vrcp.f32 %v2191_v51  ;;  %v2001_v39 = vmax.f32 %v4197_v25, 1.0 }
 0x471   : > { %v3210_v61 = vpop.eup %3209  ;;  %3223 = vrcp.f32 %v2193_v29 }
 0x472   : > { %v3212_v44 = vpop.eup %3211  ;;  %v2227_v9 = vmul.f32 %v3210_v61, %v4160_v45 }
 0x473   : > { %v2229_v4 = vmul.f32 %v3212_v44, %v4165_v60  ;;  %v4273_v63 = vpop.permute.xlu0 %2018  ;;  %v4275_v11 = vpop.permute.xlu1 %2020 }
 0x474   : > { %2274 = vrot.lane.b32.xlu0 %v2227_v9, %s3309_s7  ;;  %2272 = vrot.lane.b32.xlu1 %v2225_v32, %s3309_s7  ;;  %3225 = vrcp.f32 %v4273_v63 }
 0x475   : > { %v3214_v2 = vpop.eup %3213  ;;  %3227 = vrcp.f32 %v4275_v11 }
 0x476   : > { %v3216_v31 = vpop.eup %3215  ;;  %v2231_v27 = vmul.f32 %v3214_v2, %v4174_v18 }
 0x477   : > { %v2233_v47 = vmul.f32 %v3216_v31, %v4179_v14 }
 0x478   : > { %2278 = vrot.lane.b32.xlu0 %v2231_v27, %s3309_s7  ;;  %2276 = vrot.lane.b32.xlu1 %v2229_v4, %s3309_s7 }
 0x479   : > { %v3218_v7 = vpop.eup %3217 }
 0x47a   : > { %v3220_v28 = vpop.eup %3219  ;;  %v2235_v45 = vmul.f32 %v3218_v7, %v4188_v38  ;;  %v1990_v38 = vmax.f32 %v4120_v58, 1.0 }
 0x47b   : > { %v2237_v60 = vmul.f32 %v3220_v28, %v4193_v55  ;;  %v1989_v55 = vmax.f32 %v4118_v52, 1.0 }
 0x47c   : > { %2282 = vrot.lane.b32.xlu0 %v2235_v45, %s3309_s7  ;;  %2280 = vrot.lane.b32.xlu1 %v2233_v47, %s3309_s7 }
 0x47d   : > { %v3222_v42 = vpop.eup %3221 }
 0x47e   : > { %v3224_v34 = vpop.eup %3223  ;;  %v2239_v18 = vmul.f32 %v3222_v42, %v4203_v59  ;;  %v1992_v59 = vmax.f32 %v4139_v35, 1.0 }
 0x47f   : > { %v2241_v14 = vmul.f32 %v3224_v34, %v4207_v26  ;;  %v1994_v26 = vmax.f32 %v4153_v56, 1.0 }
 0x480   : > { %2286 = vrot.lane.b32.xlu0 %v2239_v18, %s3309_s7  ;;  %2284 = vrot.lane.b32.xlu1 %v2237_v60, %s3309_s7 }
 0x484   : > { %2288 = vrot.lane.b32.xlu1 %v2241_v14, %s3309_s7  ;;  %2022 = vrot.lane.b32.xlu0 %v1988_v20, %s3308_s18 }
 0x488   : > { %2026 = vrot.lane.b32.xlu0 %v1990_v38, %s3308_s18  ;;  %2024 = vrot.lane.b32.xlu1 %v1989_v55, %s3308_s18 }
 0x48c   : > { %2030 = vrot.lane.b32.xlu0 %v1992_v59, %s3308_s18  ;;  %2028 = vrot.lane.b32.xlu1 %v1991_v0, %s3308_s18 }
 0x490   : > { %2034 = vrot.lane.b32.xlu0 %v1994_v26, %s3308_s18  ;;  %2032 = vrot.lane.b32.xlu1 %v1993_v37, %s3308_s18 }
 0x494   : > { %2038 = vrot.lane.b32.xlu0 %v1996_v33, %s3308_s18  ;;  %2036 = vrot.lane.b32.xlu1 %v1995_v54, %s3308_s18 }
 0x498   : > { %2040 = vrot.lane.b32.xlu0 %v1997_v40, %s3308_s18 }
 0x49c   : > { %2042 = vrot.lane.b32.xlu0 %v1998_v43, %s3308_s18 }
 0x4d6   : > { %v2259_v8 = vpop.permute.xlu0 %2258 }
 0x4d7   : > { %v2306_v17 = vsel %vm2098_vm14, %v2259_v8, 1.0  ;;  %vm2111_vm14 = vcmp.gt.f32.partialorder %v4183_v62, 1.0 }
 0x4d8   : > { %2354 = vrot.lane.b32.xlu0 %v2306_v17, %s3308_s18  ;;  %v3226_v17 = vpop.eup %3225 }
 0x4da   : > { %v2261_v21 = vpop.permute.xlu1 %2260  ;;  %v2263_v12 = vpop.permute.xlu0 %2262 }
 0x4db   : > { %v2307_v1 = vsel %vm2099_vm15, %v2261_v21, 1.0  ;;  %v2308_v57 = vsel %vm2100_vm0, %v2263_v12, 1.0  ;;  %vm2113_vm15 = vcmp.gt.f32.partialorder %v4197_v25, 1.0  ;;  %v2067_v21 = vmul.f32 %v3226_v17, %v4103_v49  ;;  %v3228_v12 = vpop.eup %3227 }
 0x4dc   : > { %2356 = vrot.lane.b32.xlu1 %v2307_v1, %s3308_s18  ;;  %2044 = vrot.lane.b32.xlu0 %v1999_v46, %s3308_s18  ;;  %v2069_v63 = vmul.f32 %v3228_v12, %v4107_v36 }
 0x4de   : > { %v2267_v41 = vpop.permute.xlu0 %2266  ;;  %v2265_v15 = vpop.permute.xlu1 %2264 }
 0x4df   : > { %v2309_v22 = vsel %vm2101_vm1, %v2265_v15, 1.0  ;;  %v2310_v51 = vsel %vm2102_vm2, %v2267_v41, 1.0  ;;  %vm2498_vm2 = vcmask 7168  }
 0x4e0   : > { %2046 = vrot.lane.b32.xlu0 %v2000_v23, %s3308_s18  ;;  %2358 = vrot.lane.b32.xlu1 %v2308_v57, %s3308_s18 }
 0x4e2   : > { %v2271_v6 = vpop.permute.xlu0 %2270  ;;  %v2269_v3 = vpop.permute.xlu1 %2268 }
 0x4e3   : > { %v2311_v44 = vsel %vm2103_vm4, %v2269_v3, 1.0  ;;  %v2312_v31 = vsel %vm2104_vm6, %v2271_v6, 1.0 }
 0x4e4   : > { %2048 = vrot.lane.b32.xlu0 %v2001_v39, %s3308_s18  ;;  %2360 = vrot.lane.b32.xlu1 %v2309_v22, %s3308_s18 }
 0x4e6   : > { %v2275_v29 = vpop.permute.xlu0 %2274  ;;  %v2273_v32 = vpop.permute.xlu1 %2272 }
 0x4e7   : > { %v2314_v61 = vsel %vm2106_vm3, %v2275_v29, 1.0  ;;  %v2313_v7 = vsel %vm2105_vm10, %v2273_v32, 1.0 }
 0x4e8   : > { %2362 = vrot.lane.b32.xlu1 %v2310_v51, %s3308_s18  ;;  %2370 = vrot.lane.b32.xlu0 %v2314_v61, %s3308_s18  ;;  %v1922_v61 = vld [vmem:[%s3392_s13] sm:$0xff] }
 0x4e9   : > { %vm1938_vm0 = vcmp.eq.s32.totalorder %v1922_v61, 1  ;;  %v1929_v61 = vld [vmem:[%s3392_s13 + $0x38] sm:$0xff] }
 0x4ea   : > { %v2279_v9 = vpop.permute.xlu0 %2278  ;;  %v2277_v2 = vpop.permute.xlu1 %2276  ;;  %vm1945_vm10 = vcmp.eq.s32.totalorder %v1929_v61, 1 }
 0x4eb   : > { %v2316_v4 = vsel %vm2108_vm5, %v2279_v9, 1.0  ;;  %v2315_v42 = vsel %vm2107_vm12, %v2277_v2, 1.0 }
 0x4ec   : > { %2364 = vrot.lane.b32.xlu1 %v2311_v44, %s3308_s18  ;;  %2374 = vrot.lane.b32.xlu0 %v2316_v4, %s3308_s18  ;;  %v1923_v44 = vld [vmem:[%s3392_s13 + $0x8] sm:$0xff] }
 0x4ed   : > { %vm1939_vm1 = vcmp.eq.s32.totalorder %v1923_v44, 1 }
 0x4ee   : > { %v2283_v27 = vpop.permute.xlu0 %2282  ;;  %v2281_v28 = vpop.permute.xlu1 %2280 }
 0x4ef   : > { %v2318_v47 = vsel %vm2110_vm7, %v2283_v27, 1.0  ;;  %v2317_v18 = vsel %vm2109_vm13, %v2281_v28, 1.0 }
 0x4f0   : > { %2366 = vrot.lane.b32.xlu1 %v2312_v31, %s3308_s18  ;;  %2378 = vrot.lane.b32.xlu0 %v2318_v47, %s3308_s18  ;;  %v3310_v47 = vmov 0.0  }
 0x4f2   : > { %v2287_v45 = vpop.permute.xlu0 %2286  ;;  %v2285_v34 = vpop.permute.xlu1 %2284 }
 0x4f3   : > { %v2320_v60 = vsel %vm2112_vm11, %v2287_v45, 1.0  ;;  %v2319_v14 = vsel %vm2111_vm14, %v2285_v34, 1.0 }
 0x4f4   : > { %2368 = vrot.lane.b32.xlu1 %v2313_v7, %s3308_s18  ;;  %2382 = vrot.lane.b32.xlu0 %v2320_v60, %s3308_s18  ;;  %v4332_v7 = vsel %vm1938_vm0, 1.0, %v3310_v47 }
 0x4f5   : > { %v2539_v60 = vsel %vm2498_vm2, %v4332_v7, 0.0  ;;  %v2322_v61 = vmul.f32 0.5, %v4332_v7 }
 0x4f6   : > { %v2289_v20 = vpop.permute.xlu1 %2288  ;;  %v2023_v55 = vpop.permute.xlu0 %2022 }
 0x4f7   : > { %v2321_v38 = vsel %vm2113_vm15, %v2289_v20, 1.0  ;;  %3229 = vrcp.f32 %v2023_v55 }
 0x4f8   : > { %2372 = vrot.lane.b32.xlu1 %v2315_v42, %s3308_s18 }
 0x4fa   : > { %v2027_v59 = vpop.permute.xlu0 %2026  ;;  %v2025_v37 = vpop.permute.xlu1 %2024 }
 0x4fb   : > { %3231 = vrcp.f32 %v2025_v37 }
 0x4fc   : > { %2376 = vrot.lane.b32.xlu1 %v2317_v18, %s3308_s18  ;;  %3233 = vrcp.f32 %v2027_v59 }
 0x4fe   : > { %v2031_v0 = vpop.permute.xlu0 %2030  ;;  %v2029_v54 = vpop.permute.xlu1 %2028 }
 0x4ff   : > { %3235 = vrcp.f32 %v2029_v54 }
 0x500   : > { %2380 = vrot.lane.b32.xlu1 %v2319_v14, %s3308_s18  ;;  %3237 = vrcp.f32 %v2031_v0 }
 0x502   : > { %v2035_v26 = vpop.permute.xlu0 %2034  ;;  %v2033_v43 = vpop.permute.xlu1 %2032 }
 0x503   : > { %3239 = vrcp.f32 %v2035_v26 }
 0x504   : > { %2384 = vrot.lane.b32.xlu1 %v2321_v38, %s3308_s18  ;;  %v3230_v57 = vpop.eup %3229  ;;  %3241 = vrcp.f32 %v2033_v43 }
 0x505   : > { %v2071_v39 = vmul.f32 %v3230_v57, %v4105_v16 }
 0x506   : > { %v2039_v33 = vpop.permute.xlu0 %2038  ;;  %v2037_v46 = vpop.permute.xlu1 %2036 }
 0x507   : > { %3243 = vrcp.f32 %v2039_v33  ;;  %v1926_v33 = vld [vmem:[%s3392_s13 + $0x20] sm:$0xff] }
 0x508   : > { %v3232_v49 = vpop.eup %3231  ;;  %3245 = vrcp.f32 %v2037_v46  ;;  %vm1942_vm5 = vcmp.eq.s32.totalorder %v1926_v33, 1 }
 0x509   : > { %v2073_v36 = vmul.f32 %v3232_v49, %v4118_v52  ;;  %v3234_v3 = vpop.eup %3233  ;;  %v1924_v52 = vld [vmem:[%s3392_s13 + $0x10] sm:$0xff] }
 0x50a   : > { %v2041_v40 = vpop.permute.xlu0 %2040  ;;  %v2075_v16 = vmul.f32 %v3234_v3, %v4120_v58  ;;  %v4335_v58 = vsel %vm1939_vm1, 1.0, %v3310_v47  ;;  %vm1940_vm3 = vcmp.eq.s32.totalorder %v1924_v52, 1 }
 0x50b   : > { %v2540_v42 = vsel %vm2498_vm2, %v4335_v58, 0.0  ;;  %v4345_v38 = vsel %vm1940_vm3, 1.0, %v3310_v47 }
 0x50c   : > { %v3236_v9 = vpop.eup %3235  ;;  %v2541_v20 = vadd.f32 %v2540_v42, %v2539_v60  ;;  %v2542_v26 = vsel %vm2498_vm2, %v4345_v38, 0.0 }
 0x50d   : > { %v2077_v27 = vmul.f32 %v3236_v9, %v4125_v30  ;;  %v3238_v28 = vpop.eup %3237  ;;  %v1925_v30 = vld [vmem:[%s3392_s13 + $0x18] sm:$0xff] }
 0x50e   : > { %v2043_v8 = vpop.permute.xlu0 %2042  ;;  %v2079_v14 = vmul.f32 %v3238_v28, %v4139_v35  ;;  %vm1941_vm4 = vcmp.eq.s32.totalorder %v1925_v30, 1  ;;  %v2543_v43 = vadd.f32 %v2542_v26, %v2541_v20  ;;  %v1930_v28 = vld [vmem:[%s3392_s13 + $0x40] sm:$0xff]  ;;  %v4390_v30 = vsel %vm1945_vm10, 1.0, %v3310_v47 }
 0x50f   : > { %3247 = vrcp.f32 %v2043_v8  ;;  %v4354_v8 = vsel %vm1941_vm4, 1.0, %v3310_v47  ;;  %vm1946_vm11 = vcmp.eq.s32.totalorder %v1930_v28, 1 }
 0x510   : > { %3249 = vrcp.f32 %v2041_v40  ;;  %v3240_v18 = vpop.eup %3239 }
 0x511   : > { %v3242_v55 = vpop.eup %3241  ;;  %v2083_v54 = vmul.f32 %v3240_v18, %v4153_v56  ;;  %v1927_v56 = vld [vmem:[%s3392_s13 + $0x28] sm:$0xff] }
 0x512   : > { %v2081_v35 = vmul.f32 %v3242_v55, %v4141_v5  ;;  %vm1943_vm6 = vcmp.eq.s32.totalorder %v1927_v56, 1  ;;  %v2552_v55 = vsel %vm2498_vm2, %v4390_v30, 0.0  ;;  %v1935_v56 = vld [vmem:[%s3392_s13 + $0x68] sm:$0xff] }
 0x513   : > { %vm1951_vm0 = vcmp.eq.s32.totalorder %v1935_v56, 1 }
 0x514   : > { %v3244_v40 = vpop.eup %3243 }
 0x515   : > { %v3246_v17 = vpop.eup %3245  ;;  %v2087_v57 = vmul.f32 %v3244_v40, %v4167_v50  ;;  %v1933_v40 = vld [vmem:[%s3392_s13 + $0x58] sm:$0xff] }
 0x516   : > { %v2085_v5 = vmul.f32 %v3246_v17, %v4155_v13  ;;  %vm1949_vm14 = vcmp.eq.s32.totalorder %v1933_v40, 1 }
 0x54a   : > { %v2355_v1 = vpop.permute.xlu0 %2354 }
 0x54b   : > { %v2402_v23 = vadd.f32 %v2355_v1, %v2067_v21  ;;  %v2544_v21 = vsel %vm2498_vm2, %v4354_v8, 0.0 }
 0x54d   : > { %2434 = vrot.lane.b32.xlu0 %v2402_v23, %s3309_s7  ;;  %v3248_v23 = vpop.eup %3247 }
 0x54e   : > { %v2357_v11 = vpop.permute.xlu1 %2356  ;;  %v2045_v15 = vpop.permute.xlu0 %2044  ;;  %v2091_v50 = vmul.f32 %v3248_v23, %v4181_v24 }
 0x54f   : > { %v2403_v41 = vadd.f32 %v2357_v11, %v2069_v63  ;;  %v2545_v11 = vadd.f32 %v2544_v21, %v2543_v43 }
 0x551   : > { %2436 = vrot.lane.b32.xlu1 %v2403_v41, %s3309_s7  ;;  %v4364_v41 = vsel %vm1942_vm5, 1.0, %v3310_v47 }
 0x552   : > { %v2359_v22 = vpop.permute.xlu1 %2358  ;;  %v2047_v51 = vpop.permute.xlu0 %2046 }
 0x553   : > { %v2404_v6 = vadd.f32 %v2359_v22, %v2071_v39  ;;  %3251 = vrcp.f32 %v2047_v51  ;;  %v3250_v39 = vpop.eup %3249  ;;  %v2546_v22 = vsel %vm2498_vm2, %v4364_v41, 0.0 }
 0x554   : > { %3253 = vrcp.f32 %v2045_v15  ;;  %v1928_v15 = vld [vmem:[%s3392_s13 + $0x30] sm:$0xff]  ;;  %v2089_v13 = vmul.f32 %v3250_v39, %v4169_v48 }
 0x555   : > { %2438 = vrot.lane.b32.xlu0 %v2404_v6, %s3309_s7  ;;  %vm1944_vm7 = vcmp.eq.s32.totalorder %v1928_v15, 1  ;;  %v4430_v15 = vsel %vm1951_vm0, 1.0, %v3310_v47 }
 0x556   : > { %v2361_v29 = vpop.permute.xlu1 %2360  ;;  %v2049_v31 = vpop.permute.xlu0 %2048  ;;  %v4381_v52 = vsel %vm1944_vm7, 1.0, %v3310_v47 }
 0x557   : > { %v2405_v32 = vadd.f32 %v2361_v29, %v2073_v36  ;;  %3255 = vrcp.f32 %v2049_v31  ;;  %v2547_v29 = vadd.f32 %v2546_v22, %v2545_v11  ;;  %v2550_v42 = vsel %vm2498_vm2, %v4381_v52, 0.0 }
 0x558   : > { %v2564_v22 = vsel %vm2498_vm2, %v4430_v15, 0.0 }
 0x559   : > { %2440 = vrot.lane.b32.xlu1 %v2405_v32, %s3309_s7  ;;  %v4374_v32 = vsel %vm1943_vm6, 1.0, %v3310_v47 }
 0x55a   : > { %v2363_v4 = vpop.permute.xlu1 %2362  ;;  %v2371_v59 = vpop.permute.xlu0 %2370  ;;  %v2548_v24 = vsel %vm2498_vm2, %v4374_v32, 0.0 }
 0x55b   : > { %v2406_v2 = vadd.f32 %v2363_v4, %v2075_v16  ;;  %v2410_v12 = vadd.f32 %v2371_v59, %v2083_v54 }
 0x55d   : > { %2442 = vrot.lane.b32.xlu0 %v2406_v2, %s3309_s7 }
 0x55e   : > { %v2365_v45 = vpop.permute.xlu1 %2364  ;;  %v2375_v63 = vpop.permute.xlu0 %2374 }
 0x55f   : > { %v2407_v34 = vadd.f32 %v2365_v45, %v2077_v27  ;;  %v2412_v6 = vadd.f32 %v2375_v63, %v2087_v57  ;;  %v2549_v27 = vadd.f32 %v2548_v24, %v2547_v29 }
 0x560   : > { %v3252_v3 = vpop.eup %3251 }
 0x561   : > { %2444 = vrot.lane.b32.xlu1 %v2407_v34, %s3309_s7  ;;  %v3254_v44 = vpop.eup %3253  ;;  %v2095_v2 = vmul.f32 %v3252_v3, %v4195_v19  ;;  %v2551_v18 = vadd.f32 %v2550_v42, %v2549_v27 }
 0x562   : > { %v2367_v0 = vpop.permute.xlu1 %2366  ;;  %v2379_v51 = vpop.permute.xlu0 %2378  ;;  %v2093_v48 = vmul.f32 %v3254_v44, %v4183_v62 }
 0x563   : > { %v2408_v37 = vadd.f32 %v2367_v0, %v2079_v14  ;;  %v2414_v9 = vadd.f32 %v2379_v51, %v2091_v50  ;;  %v1931_v14 = vld [vmem:[%s3392_s13 + $0x48] sm:$0xff]  ;;  %v4399_v0 = vsel %vm1946_vm11, 1.0, %v3310_v47  ;;  %v2553_v26 = vadd.f32 %v2552_v55, %v2551_v18 }
 0x564   : > { %v3256_v45 = vpop.eup %3255  ;;  %vm1947_vm12 = vcmp.eq.s32.totalorder %v1931_v14, 1  ;;  %v2327_v14 = vmul.f32 0.5, %v4374_v32 }
 0x565   : > { %2446 = vrot.lane.b32.xlu0 %v2408_v37, %s3309_s7  ;;  %v2097_v62 = vmul.f32 %v3256_v45, %v4197_v25  ;;  %v1932_v37 = vld [vmem:[%s3392_s13 + $0x50] sm:$0xff]  ;;  %v2554_v25 = vsel %vm2498_vm2, %v4399_v0, 0.0  ;;  %v4406_v33 = vsel %vm1947_vm12, 1.0, %v3310_v47  ;;  %v2325_v45 = vmul.f32 0.5, %v4354_v8 }
 0x566   : > { %v2369_v46 = vpop.permute.xlu1 %2368  ;;  %v2383_v31 = vpop.permute.xlu0 %2382  ;;  %vm1948_vm13 = vcmp.eq.s32.totalorder %v1932_v37, 1  ;;  %v2555_v54 = vadd.f32 %v2554_v25, %v2553_v26  ;;  %v2328_v8 = vmul.f32 0.5, %v4381_v52 }
 0x567   : > { %v2409_v1 = vadd.f32 %v2369_v46, %v2081_v35  ;;  %v2416_v19 = vadd.f32 %v2383_v31, %v2095_v2  ;;  %v2556_v35 = vsel %vm2498_vm2, %v4406_v33, 0.0  ;;  %v4412_v43 = vsel %vm1948_vm13, 1.0, %v3310_v47  ;;  %v1934_v46 = vld [vmem:[%s3392_s13 + $0x60] sm:$0xff] }
 0x568   : > { %v2557_v17 = vadd.f32 %v2556_v35, %v2555_v54  ;;  %v2558_v21 = vsel %vm2498_vm2, %v4412_v43, 0.0  ;;  %vm1950_vm15 = vcmp.eq.s32.totalorder %v1934_v46, 1  ;;  %v2324_v2 = vmul.f32 0.5, %v4345_v38 }
 0x569   : > { %2448 = vrot.lane.b32.xlu1 %v2409_v1, %s3309_s7  ;;  %2450 = vrot.lane.b32.xlu0 %v2410_v12, %s3309_s7  ;;  %v4418_v12 = vsel %vm1949_vm14, 1.0, %v3310_v47  ;;  %v4424_v63 = vsel %vm1950_vm15, 1.0, %v3310_v47  ;;  %v2330_v35 = vmul.f32 0.5, %v4399_v0  ;;  %v2332_v52 = vmul.f32 0.5, %v4412_v43 }
 0x56a   : > { %v2373_v49 = vpop.permute.xlu1 %2372  ;;  %v2559_v1 = vadd.f32 %v2558_v21, %v2557_v17  ;;  %v2560_v23 = vsel %vm2498_vm2, %v4418_v12, 0.0  ;;  %v2562_v11 = vsel %vm2498_vm2, %v4424_v63, 0.0  ;;  %v2335_v43 = vmul.f32 0.5, %v4430_v15 }
 0x56b   : > { %v2411_v36 = vadd.f32 %v2373_v49, %v2085_v5  ;;  %v1936_v5 = vld [vmem:[%s3392_s13 + $0x70] sm:$0xff]  ;;  %v1937_v49 = vld [vmem:[%s3392_s13 + $0x78] sm:$0xff] }
 0x56c   : > { %v2561_v57 = vadd.f32 %v2560_v23, %v2559_v1  ;;  %vm1952_vm1 = vcmp.eq.s32.totalorder %v1936_v5, 1  ;;  %vm1953_vm3 = vcmp.eq.s32.totalorder %v1937_v49, 1  ;;  %v2331_v23 = vmul.f32 0.5, %v4406_v33 }
 0x56d   : > { %2452 = vrot.lane.b32.xlu1 %v2411_v36, %s3309_s7  ;;  %2454 = vrot.lane.b32.xlu0 %v2412_v6, %s3309_s7  ;;  %v4436_v6 = vsel %vm1952_vm1, 1.0, %v3310_v47  ;;  %v4441_v3 = vsel %vm1953_vm3, 1.0, %v3310_v47 }
 0x56e   : > { %v2377_v16 = vpop.permute.xlu1 %2376  ;;  %v2563_v39 = vadd.f32 %v2562_v11, %v2561_v57  ;;  %v2566_v36 = vsel %vm2498_vm2, %v4436_v6, 0.0 }
 0x56f   : > { %v2413_v4 = vadd.f32 %v2377_v16, %v2089_v13  ;;  %v2568_v13 = vsel %vm2498_vm2, %v4441_v3, 0.0  ;;  %v2323_v16 = vmul.f32 0.5, %v4335_v58  ;;  %v2326_v58 = vmul.f32 0.5, %v4364_v41 }
 0x570   : > { %v2565_v50 = vadd.f32 %v2564_v22, %v2563_v39  ;;  %v2329_v41 = vmul.f32 0.5, %v4390_v30  ;;  %v2333_v30 = vmul.f32 0.5, %v4418_v12  ;;  %v2336_v12 = vmul.f32 0.5, %v4436_v6 }
 0x571   : > { %2456 = vrot.lane.b32.xlu1 %v2413_v4, %s3309_s7  ;;  %2458 = vrot.lane.b32.xlu0 %v2414_v9, %s3309_s7 }
 0x572   : > { %v2381_v60 = vpop.permute.xlu1 %2380  ;;  %v2567_v51 = vadd.f32 %v2566_v36, %v2565_v50  ;;  %v2334_v50 = vmul.f32 0.5, %v4424_v63 }
 0x573   : > { %v2415_v34 = vadd.f32 %v2381_v60, %v2093_v48 }
 0x574   : > { %v2569_v29 = vadd.f32 %v2568_v13, %v2567_v51 }
 0x575   : > { %2460 = vrot.lane.b32.xlu1 %v2415_v34, %s3309_s7  ;;  %2462 = vrot.lane.b32.xlu0 %v2416_v19, %s3309_s7 }
 0x576   : > { %v2385_v20 = vpop.permute.xlu1 %2384 }
 0x577   : > { %v2417_v59 = vadd.f32 %v2385_v20, %v2097_v62 }
 0x579   : > { %2464 = vrot.lane.b32.xlu1 %v2417_v59, %s3309_s7 }
 0x59d   : > { %2570 = vadd.xlane.f32.xlu1 %v2569_v29 }
 0x5bf   : > { %v2435_v44 = vpop.permute.xlu0 %2434 }
 0x5c0   : > { %v2482_v24 = vmul.f32 %v2435_v44, %v2322_v61 }
 0x5c2   : > { %v2499_v31 = vsel %vm2498_vm2, %v2482_v24, 0.0 }
 0x5c3   : > { %v2437_v9 = vpop.permute.xlu1 %2436 }
 0x5c4   : > { %v2483_v4 = vmul.f32 %v2437_v9, %v2323_v16 }
 0x5c6   : > { %v2500_v47 = vsel %vm2498_vm2, %v2483_v4, 0.0 }
 0x5c7   : > { %v2501_v48 = vadd.f32 %v2500_v47, %v2499_v31  ;;  %v2439_v27 = vpop.permute.xlu0 %2438 }
 0x5c8   : > { %v2484_v28 = vmul.f32 %v2439_v27, %v2324_v2  ;;  %v2337_v27 = vmul.f32 0.5, %v4441_v3 }
 0x5ca   : > { %v2502_v60 = vsel %vm2498_vm2, %v2484_v28, 0.0 }
 0x5cb   : > { %v2503_v7 = vadd.f32 %v2502_v60, %v2501_v48  ;;  %v2441_v42 = vpop.permute.xlu1 %2440 }
 0x5cc   : > { %v2485_v19 = vmul.f32 %v2441_v42, %v2325_v45 }
 0x5ce   : > { %v2504_v34 = vsel %vm2498_vm2, %v2485_v19, 0.0 }
 0x5cf   : > { %v2505_v62 = vadd.f32 %v2504_v34, %v2503_v7  ;;  %v2443_v38 = vpop.permute.xlu0 %2442 }
 0x5d0   : > { %v2486_v18 = vmul.f32 %v2443_v38, %v2326_v58 }
 0x5d2   : > { %v2506_v20 = vsel %vm2498_vm2, %v2486_v18, 0.0 }
 0x5d3   : > { %v2507_v55 = vadd.f32 %v2506_v20, %v2505_v62  ;;  %v2445_v59 = vpop.permute.xlu1 %2444 }
 0x5d4   : > { %v2487_v26 = vmul.f32 %v2445_v59, %v2327_v14 }
 0x5d6   : > { %v2508_v37 = vsel %vm2498_vm2, %v2487_v26, 0.0 }
 0x5d7   : > { %v2509_v25 = vadd.f32 %v2508_v37, %v2507_v55  ;;  %v2447_v54 = vpop.permute.xlu0 %2446 }
 0x5d8   : > { %v2488_v40 = vmul.f32 %v2447_v54, %v2328_v8 }
 0x5da   : > { %v2510_v17 = vsel %vm2498_vm2, %v2488_v40, 0.0 }
 0x5db   : > { %v2511_v46 = vadd.f32 %v2510_v17, %v2509_v25  ;;  %v2449_v32 = vpop.permute.xlu1 %2448  ;;  %v2451_v21 = vpop.permute.xlu0 %2450 }
 0x5dc   : > { %v2489_v1 = vmul.f32 %v2449_v32, %v2329_v41  ;;  %v2490_v56 = vmul.f32 %v2451_v21, %v2330_v35 }
 0x5de   : > { %v2512_v57 = vsel %vm2498_vm2, %v2489_v1, 0.0  ;;  %v2514_v0 = vsel %vm2498_vm2, %v2490_v56, 0.0 }
 0x5df   : > { %v2513_v5 = vadd.f32 %v2512_v57, %v2511_v46  ;;  %v2453_v11 = vpop.permute.xlu1 %2452  ;;  %v2455_v39 = vpop.permute.xlu0 %2454 }
 0x5e0   : > { %v2491_v49 = vmul.f32 %v2453_v11, %v2331_v23  ;;  %v2492_v22 = vmul.f32 %v2455_v39, %v2332_v52 }
 0x5e1   : > { %v2515_v36 = vadd.f32 %v2514_v0, %v2513_v5 }
 0x5e2   : > { %v2516_v51 = vsel %vm2498_vm2, %v2491_v49, 0.0  ;;  %v2518_v61 = vsel %vm2498_vm2, %v2492_v22, 0.0 }
 0x5e3   : > { %v2517_v13 = vadd.f32 %v2516_v51, %v2515_v36  ;;  %v2457_v33 = vpop.permute.xlu1 %2456  ;;  %v2459_v29 = vpop.permute.xlu0 %2458 }
 0x5e4   : > { %v2493_v44 = vmul.f32 %v2457_v33, %v2333_v30  ;;  %v2494_v16 = vmul.f32 %v2459_v29, %v2334_v50 }
 0x5e5   : > { %v2519_v24 = vadd.f32 %v2518_v61, %v2517_v13 }
 0x5e6   : > { %v2520_v9 = vsel %vm2498_vm2, %v2493_v44, 0.0  ;;  %v2522_v31 = vsel %vm2498_vm2, %v2494_v16, 0.0 }
 0x5e7   : > { %v2521_v4 = vadd.f32 %v2520_v9, %v2519_v24  ;;  %v2461_v2 = vpop.permute.xlu1 %2460  ;;  %v2463_v63 = vpop.permute.xlu0 %2462 }
 0x5e8   : > { %v2495_v47 = vmul.f32 %v2461_v2, %v2335_v43  ;;  %v2496_v48 = vmul.f32 %v2463_v63, %v2336_v12 }
 0x5e9   : > { %v2523_v28 = vadd.f32 %v2522_v31, %v2521_v4 }
 0x5ea   : > { %v2524_v15 = vsel %vm2498_vm2, %v2495_v47, 0.0  ;;  %v2526_v7 = vsel %vm2498_vm2, %v2496_v48, 0.0 }
 0x5eb   : > { %v2525_v45 = vadd.f32 %v2524_v15, %v2523_v28  ;;  %v2465_v60 = vpop.permute.xlu1 %2464 }
 0x5ec   : > { %v2497_v6 = vmul.f32 %v2465_v60, %v2337_v27 }
 0x5ed   : > { %v2527_v42 = vadd.f32 %v2526_v7, %v2525_v45 }
 0x5ee   : > { %v2528_v19 = vsel %vm2498_vm2, %v2497_v6, 0.0  ;;  %vm2581_vm2 = vcmp.eq.s32.totalorder %v4098_v53, 0 }
 0x5ef   : > { %v2529_v58 = vadd.f32 %v2528_v19, %v2527_v42  ;;  %vm2583_vm4 = vmand %vm2581_vm2, %vm1556_vm8 }
 0x5f0   : > { %vm2582_vm5 = vmand %vm2581_vm2, %vm1555_vm9 }
 0x5f1   : > { %2530 = vadd.xlane.f32.xlu0 %v2529_v58 }
 0x626   : > { %v2571_v34 = vpop.xlane.xlu1 %2570 }
 0x627   : > { %v2572_v62 = vrot.slane %v2571_v34, 4 }
 0x629   : > { %v2573_v38 = vadd.f32 %v2572_v62, %v2571_v34 }
 0x62b   : > { %v2574_v18 = vrot.slane %v2573_v38, 2 }
 0x62d   : > { %v2575_v55 = vadd.f32 %v2574_v18, %v2573_v38 }
 0x62f   : > { %v2576_v8 = vrot.slane %v2575_v55, 1 }
 0x631   : > { %v2577_v54 = vadd.f32 %v2576_v8, %v2575_v55 }
 0x67a   : > { %v2531_v14 = vpop.xlane.xlu0 %2530 }
 0x67b   : > { %v2532_v20 = vrot.slane %v2531_v14, 4 }
 0x67d   : > { %v2533_v3 = vadd.f32 %v2532_v20, %v2531_v14 }
 0x67f   : > { %v2534_v59 = vrot.slane %v2533_v3, 2 }
 0x681   : > { %v2535_v26 = vadd.f32 %v2534_v59, %v2533_v3 }
 0x683   : > { %v2536_v37 = vrot.slane %v2535_v26, 1 }
 0x685   : > { %v2537_v25 = vadd.f32 %v2536_v37, %v2535_v26 }
 0x687   : > { %2864 = vpush %v2537_v25 }
 0x688   : > { %2866 = vpush %v2577_v54 }
 0x6b8   : > { %s2865_s10 = spop %2864 }
 0x6b9   : > { %v2586_v40 = vstv %s2865_s10  ;;  %s2867_s13 = spop %2866 }
 0x6ba   : > { %v2584_v41 = vstv %s2867_s13 }
 0x6bb   : > { %v2585_v35 = vsel %vm2583_vm4, %v2584_v41, 0.0 }
 0x6bc   : > { %v2587_v17 = vsel %vm2582_vm5, %v2586_v40, %v2585_v35 }
 0x6bd   : > { %2588 = vst [vmem:[%s3409_s29] sm:$0xff] %v2587_v17 }
 0x6be PF: > { %s15_s22 = sadd.s32 1, %s3295_s22   ;;  %s4504_s18 = smov %s3287_s20 }
 0x6bf   : > { %p12_p11 = scmp.ge.s32.totalorder %s15_s22, 6   ;;  %s4505_s19 = smov %s3291_s21 }
 0x6c0   : > { %s4506_s20 = smov %s4509_s23  ;;  %s4507_s21 = smov %s4513_s24 }
 0x6c1   :  { %14 = sbr.rel (!%p12_p11) target bundleno = 3 (0x3), region = 90 }

</bundles_post_ra>
